<compile_context>
chip_gen: v7x
topology: tpu7x:2x2x1
jax: 0.10.0
libtpu: 0.0.40
codegen_flags: <defaults>
</compile_context>

<pallas_src>
import math
import functools

import jax
import jax.numpy as jnp
from jax.experimental import pallas as pl
from jax.experimental.pallas import tpu as pltpu


LAYER_KEYS = ("slf_win", "slf_bin", "slf_wout",
              "crs_wq", "crs_bq", "crs_wkv", "crs_bkv", "crs_wout",
              "ffn_w1", "ffn_b1", "ffn_w2", "vecs")


# ----------------------------- shared math helpers ------------------------- #

def _layernorm(x, gamma, beta, eps=1e-6):
    mu = jnp.mean(x, axis=-1, keepdims=True)
    var = jnp.mean((x - mu) * (x - mu), axis=-1, keepdims=True)
    return (x - mu) * jax.lax.rsqrt(var + eps) * gamma + beta


def _attn_core(q, kv_list, mask, w_out, bo, gamma, beta, x_res,
               *, H, dk, dv, bt, tq):
    """Scaled-dot-product attention core + output proj + residual + post-LN.

    q       : (bt*tq, H*dk) f32   (1/sqrt(dk) already folded into Wq/bq)
    kv_list : list of bt arrays (Tk, H*dk + H*dv) f32
    mask    : (bt, tq, Tk) int8 (1 = keep, 0 = masked) or None
    w_out   : (H*dv, D) bf16 ; bo/gamma/beta : (1, D) f32
    x_res   : (bt*tq, D) f32 residual
    """
    nk = H * dk
    ctx_rows = []
    for b in range(bt):                      # static unroll over the batch tile
        qb = q[b * tq:(b + 1) * tq].astype(jnp.bfloat16)          # (tq, H*dk)
        kvb = kv_list[b]
        kb = kvb[:, :nk].astype(jnp.bfloat16)                     # (Tk, H*dk)
        vb = kvb[:, nk:].astype(jnp.bfloat16)                     # (Tk, H*dv)
        mb = None if mask is None else (mask[b] != 0)             # (tq, Tk) bool
        heads = []
        for h in range(H):                   # static unroll over heads
            # per-head score matmul (K = dk is inherent to MHA)
            s = jnp.dot(qb[:, h * dk:(h + 1) * dk],
                        kb[:, h * dk:(h + 1) * dk].T,
                        preferred_element_type=jnp.float32)       # (tq, Tk) f32
            if mb is not None:
                s = jnp.where(mb, s, -1e9)
            # softmax in f32; normalization via EUP approximate reciprocal
            s = s - jnp.max(s, axis=-1, keepdims=True)
            p = jnp.exp(s)
            p = p * pl.reciprocal(jnp.sum(p, axis=-1, keepdims=True), approx=True)
            heads.append(jnp.dot(p.astype(jnp.bfloat16),
                                 vb[:, h * dv:(h + 1) * dv],
                                 preferred_element_type=jnp.float32))   # (tq, dv)
        ctx_rows.append(jnp.concatenate(heads, axis=1))           # (tq, H*dv)
    ctx = ctx_rows[0] if bt == 1 else jnp.concatenate(ctx_rows, axis=0)

    # single full-width output projection (K = H*dv), residual in f32
    out = jnp.dot(ctx.astype(jnp.bfloat16), w_out,
                  preferred_element_type=jnp.float32) + bo + x_res
    return _layernorm(out, gamma, beta)
    # TODO(synk): online-softmax KV tiling (fori_loop) for long T/S so the
    # (tq, Tk) scores never materialize whole inside v7x's 64 MiB VMEM.


# ----------------------------- fused decoder kernel ------------------------ #

def decoder_kernel(x_emb_ref, pe_ref, ln1_ref, mask_ref, enc_ref,
                   slf_win_ref, slf_bin_ref, slf_wout_ref,
                   crs_wq_ref, crs_bq_ref, crs_wkv_ref, crs_bkv_ref, crs_wout_ref,
                   ffn_w1_ref, ffn_b1_ref, ffn_w2_ref, vec_ref,
                   o_ref, *, n_head, d_k, d_v, scale, resident):
    l = pl.program_id(1)
    # resident weights keep the full (L, ...) slab in VMEM -> dynamic index;
    # streamed weights arrive one layer at a time -> static index 0.
    lsel = l if resident else 0

    Bt, T, D = o_ref.shape
    nq = n_head * d_k

    # Prelude fused into the first layer step: embedding scale + positional
    # encoding (batch-indexed, faithful to the batch-first reference) + LN1.
    @pl.when(l == 0)
    def _prelude():
        ln1 = ln1_ref[...]                                      # (2, D)
        xe = x_emb_ref[...] * scale + pe_ref[...]               # (Bt,T,D)+(Bt,1,D)
        o_ref[...] = _layernorm(xe, ln1[0:1], ln1[1:2])

    x = o_ref[...].reshape(Bt * T, D)       # resident f32 activation, flat rows
    mask = mask_ref[...]                    # (Bt, T, T) int8
    vec = vec_ref[lsel]                     # (9, D) f32: [slf bo,g,b | crs bo,g,b | ffn b2,g,b]

    # ---- 1) masked self-attention: one fused full-width QKV matmul ---------
    qkv = jnp.dot(x.astype(jnp.bfloat16), slf_win_ref[lsel],
                  preferred_element_type=jnp.float32) + slf_bin_ref[lsel]
    q = qkv[:, :nq]
    kv = [qkv[b * T:(b + 1) * T, nq:] for b in range(Bt)]
    x = _attn_core(q, kv, mask, slf_wout_ref[lsel],
                   vec[0:1], vec[1:2], vec[2:3], x,
                   H=n_head, dk=d_k, dv=d_v, bt=Bt, tq=T)

    # ---- 2) cross-attention over enc_output (dec_enc_attn_mask=None) -------
    q = jnp.dot(x.astype(jnp.bfloat16), crs_wq_ref[lsel],
                preferred_element_type=jnp.float32) + crs_bq_ref[lsel]
    w_kv = crs_wkv_ref[lsel]
    b_kv = crs_bkv_ref[lsel]
    kv = [jnp.dot(enc_ref[b], w_kv, preferred_element_type=jnp.float32) + b_kv
          for b in range(Bt)]                                   # enc is bf16 already
    x = _attn_core(q, kv, None, crs_wout_ref[lsel],
                   vec[3:4], vec[4:5], vec[5:6], x,
                   H=n_head, dk=d_k, dv=d_v, bt=Bt, tq=T)

    # ---- 3) position-wise FFN + post-LN -------------------------------------
    # TODO(synk): K-tile over dff with an accumulator for very large dff on
    # v7x (64 MiB VMEM) instead of loading w1/w2 whole.
    h = jnp.dot(x.astype(jnp.bfloat16), ffn_w1_ref[lsel],
                preferred_element_type=jnp.float32) + ffn_b1_ref[lsel]
    h = jnp.maximum(h, 0.0)
    y = jnp.dot(h.astype(jnp.bfloat16), ffn_w2_ref[lsel],
                preferred_element_type=jnp.float32) + vec[6:7] + x
    o_ref[...] = _layernorm(y, vec[7:8], vec[8:9]).reshape(Bt, T, D)


# ----------------------------- wrapper -------------------------------------- #

def decoder_forward(params, packed, trg_seq, trg_mask, enc_output, src_mask=None,
                    return_attn=False, block_b=None, weights_resident=None):
    d_model = params["d_model"]
    n_head, d_k, d_v = params["n_head"], params["d_k"], params["d_v"]
    n_layers = params["n_layers"]
    B, T = trg_seq.shape
    S = enc_output.shape[1]

    if block_b is None:
        block_b = 1
    assert B % block_b == 0, "block_b must divide the batch size"
    nb = B // block_b

    # glue done by XLA outside the kernel: embedding gather, PE slice, casts
    x_emb = jnp.take(params["emb"], trg_seq, axis=0)            # (B, T, D) f32
    pe_b = params["pe"][:B]                                     # (B, 1, D) batch-indexed (faithful)
    mask_i8 = (trg_mask != 0).astype(jnp.int8)                  # 4x less HBM than f32
    enc_bf = enc_output.astype(jnp.bfloat16)                    # 2x less HBM than f32

    layer_arrays = [packed[k] for k in LAYER_KEYS]

    # Generation-aware VMEM budget (128 MiB on v5e/v6e, 64 MiB on v7x).
    try:
        vmem_cap = int(pltpu.get_tpu_info().vmem_capacity_bytes)
    except Exception:                                           # pragma: no cover
        vmem_cap = 64 * 1024 * 1024
    vmem_limit = int(min(vmem_cap * 3 // 4, 100 * 1024 * 1024))

    if weights_resident is None:
        # keep ALL layer weights VMEM-resident when they fit comfortably
        # (biggest HBM-traffic win on v5e/v6e); otherwise stream per layer.
        layer_bytes = sum(int(a.size) * a.dtype.itemsize for a in layer_arrays)
        weights_resident = layer_bytes <= vmem_cap // 4

    def _layer_spec(arr):
        nd = arr.ndim
        if weights_resident:
            # full-extent, constant block index -> DMA'd once, lives in VMEM
            return pl.BlockSpec(tuple(arr.shape), lambda b, l, _n=nd: (0,) * _n)
        # streamed: one layer slab per grid step (double-buffered by Pallas)
        return pl.BlockSpec((1,) + tuple(arr.shape[1:]),
                            lambda b, l, _n=nd: (l,) + (0,) * (_n - 1))

    in_specs = [
        pl.BlockSpec((block_b, T, d_model), lambda b, l: (b, 0, 0)),   # x_emb
        pl.BlockSpec((block_b, 1, d_model), lambda b, l: (b, 0, 0)),   # pe (batch-indexed)
        pl.BlockSpec((2, d_model), lambda b, l: (0, 0)),               # ln1 gamma/beta
        pl.BlockSpec((block_b, T, T), lambda b, l: (b, 0, 0)),         # trg_mask int8
        pl.BlockSpec((block_b, S, d_model), lambda b, l: (b, 0, 0)),   # enc_output bf16
    ] + [_layer_spec(a) for a in layer_arrays]

    kernel = functools.partial(decoder_kernel, n_head=n_head, d_k=d_k, d_v=d_v,
                               scale=float(d_model) ** 0.5,
                               resident=bool(weights_resident))

    out = pl.pallas_call(
        kernel,
        out_shape=jax.ShapeDtypeStruct((B, T, d_model), jnp.float32),
        grid=(nb, n_layers),
        in_specs=in_specs,
        out_specs=pl.BlockSpec((block_b, T, d_model), lambda b, l: (b, 0, 0)),
        compiler_params=pltpu.CompilerParams(
            # batch tiles split across TensorCores; the layer axis is the
            # sequential one so the activation block stays VMEM-resident.
            # (keep nb >= 2 in production if you want both v7x cores busy)
            dimension_semantics=("parallel", "arbitrary"),
            vmem_limit_bytes=vmem_limit,
        ),
    )(x_emb, pe_b, packed["ln1"], mask_i8, enc_bf, *layer_arrays)

    # TODO(synk): return_attn=True path (attention maps are not materialized).
    return out, []


# ----------------------------- param init & packing ------------------------- #

def make_params(key, n_trg_vocab, n_layers, n_head, d_k, d_v, d_model, dff,
                pad_idx, max_len=5000):
    """Torch-like ("natural") parameters."""
    cnt = [0]

    def nxt():
        cnt[0] += 1
        return jax.random.fold_in(key, cnt[0])

    def nrm(shape, scale=0.1):
        return (scale * jax.random.normal(nxt(), shape)).astype(jnp.float32)

    emb = nrm((n_trg_vocab, d_model))
    emb = emb.at[pad_idx].set(0.0)                          # nn.Embedding padding_idx

    # positional encoding buffer, exactly as the PyTorch module builds it
    position = jnp.arange(max_len, dtype=jnp.float32)[:, None]
    div_term = jnp.exp(jnp.arange(0.0, d_model, 2.0) *
                       (-math.log(10000.0) / d_model))
    pe = jnp.zeros((max_len, 1, d_model), jnp.float32)
    pe = pe.at[:, 0, 0::2].set(jnp.sin(position * div_term))
    pe = pe.at[:, 0, 1::2].set(jnp.cos(position * div_term))

    def mha():
        return {"wq": nrm((d_model, n_head * d_k)), "bq": nrm((n_head * d_k,)),
                "wk": nrm((d_model, n_head * d_k)), "bk": nrm((n_head * d_k,)),
                "wv": nrm((d_model, n_head * d_v)), "bv": nrm((n_head * d_v,)),
                "wo": nrm((n_head * d_v, d_model)), "bo": nrm((d_model,)),
                "g": 1.0 + nrm((d_model,), 0.05), "b": nrm((d_model,), 0.05)}

    def ffn():
        return {"w1": nrm((d_model, dff)), "b1": nrm((dff,)),
                "w2": nrm((dff, d_model)), "b2": nrm((d_model,)),
                "g": 1.0 + nrm((d_model,), 0.05), "b": nrm((d_model,), 0.05)}

    layers = [{"slf": mha(), "crs": mha(), "ffn": ffn()} for _ in range(n_layers)]

    return {"emb": emb, "pe": pe,
            "ln1_g": 1.0 + nrm((d_model,), 0.05), "ln1_b": nrm((d_model,), 0.05),
            "layers": layers,
            "d_model": d_model, "n_head": n_head, "d_k": d_k, "d_v": d_v,
            "n_layers": n_layers, "dff": dff}


def pack_decoder_params(p):
    """Pack per-layer params into the fused, stacked kernel layout
    (done once at init; 1/sqrt(d_k) folded into Wq/bq, weights cast to bf16)."""
    inv = 1.0 / float(p["d_k"]) ** 0.5
    acc = {k: [] for k in LAYER_KEYS}
    for lp in p["layers"]:
        s, c, f = lp["slf"], lp["crs"], lp["ffn"]
        acc["slf_win"].append(jnp.concatenate([s["wq"] * inv, s["wk"], s["wv"]],
                                              axis=1).astype(jnp.bfloat16))
        acc["slf_bin"].append(jnp.concatenate([s["bq"] * inv, s["bk"], s["bv"]])[None, :])
        acc["slf_wout"].append(s["wo"].astype(jnp.bfloat16))
        acc["crs_wq"].append((c["wq"] * inv).astype(jnp.bfloat16))
        acc["crs_bq"].append((c["bq"] * inv)[None, :])
        acc["crs_wkv"].append(jnp.concatenate([c["wk"], c["wv"]], axis=1)
                              .astype(jnp.bfloat16))
        acc["crs_bkv"].append(jnp.concatenate([c["bk"], c["bv"]])[None, :])
        acc["crs_wout"].append(c["wo"].astype(jnp.bfloat16))
        acc["ffn_w1"].append(f["w1"].astype(jnp.bfloat16))
        acc["ffn_b1"].append(f["b1"][None, :])
        acc["ffn_w2"].append(f["w2"].astype(jnp.bfloat16))
        acc["vecs"].append(jnp.stack([s["bo"], s["g"], s["b"],
                                      c["bo"], c["g"], c["b"],
                                      f["b2"], f["g"], f["b"]]))      # (9, D)
    packed = {k: jnp.stack(v) for k, v in acc.items()}
    packed["ln1"] = jnp.stack([p["ln1_g"], p["ln1_b"]])               # (2, D)
    return packed


# ----------------------------- pure-JAX reference ---------------------------- #

def reference_forward(p, trg_seq, trg_mask, enc_output):
    D, H, dk, dv = p["d_model"], p["n_head"], p["d_k"], p["d_v"]
    B = trg_seq.shape[0]

    def mha(xq, xkv, mask, a):
        Bq, Tq, _ = xq.shape
        Tk = xkv.shape[1]
        q = (xq @ a["wq"] + a["bq"]).reshape(Bq, Tq, H, dk).transpose(0, 2, 1, 3)
        k = (xkv @ a["wk"] + a["bk"]).reshape(Bq, Tk, H, dk).transpose(0, 2, 1, 3)
        v = (xkv @ a["wv"] + a["bv"]).reshape(Bq, Tk, H, dv).transpose(0, 2, 1, 3)
        s = jnp.einsum("bhqd,bhkd->bhqk", q, k) / (dk ** 0.5)
        if mask is not None:
            s = jnp.where(mask[:, None, :, :] != 0, s, -1e9)
        w = jax.nn.softmax(s, axis=-1)
        ctx = jnp.einsum("bhqk,bhkd->bhqd", w, v).transpose(0, 2, 1, 3)
        ctx = ctx.reshape(Bq, Tq, H * dv)
        return _layernorm(ctx @ a["wo"] + a["bo"] + xq, a["g"], a["b"])

    def ffn(x, f):
        h = jnp.maximum(x @ f["w1"] + f["b1"], 0.0)
        return _layernorm(h @ f["w2"] + f["b2"] + x, f["g"], f["b"])

    x = p["emb"][trg_seq] * (D ** 0.5)
    x = x + p["pe"][:B]                 # batch-indexed PE (faithful to the reference quirk)
    x = _layernorm(x, p["ln1_g"], p["ln1_b"])
    for lp in p["layers"]:
        x = mha(x, x, trg_mask, lp["slf"])
        x = mha(x, enc_output, None, lp["crs"])
        x = ffn(x, lp["ffn"])
    return x


# ----------------------------- main ------------------------------------------ #

if __name__ == "__main__":
    n_trg_vocab, n_layers, n_head = 50, 2, 2
    d_k, d_v, d_model, dff, pad_idx = 8, 8, 32, 64, 0
    B, T, S = 2, 8, 8

    key = jax.random.PRNGKey(0)
    k_par, k_seq, k_enc = jax.random.split(key, 3)

    natural = make_params(k_par, n_trg_vocab, n_layers, n_head,
                          d_k, d_v, d_model, dff, pad_idx)
    packed = pack_decoder_params(natural)

    trg_seq = jax.random.randint(k_seq, (B, T), 1, n_trg_vocab, dtype=jnp.int32)
    trg_seq = trg_seq.at[:, -2:].set(pad_idx)        # some padding at the tail

    # trg_mask = pad-mask & subsequent(causal)-mask, shape (B, T, T)
    pad_mask = (trg_seq != pad_idx)[:, None, :]
    sub_mask = jnp.tril(jnp.ones((1, T, T), dtype=bool))
    trg_mask = (pad_mask & sub_mask).astype(jnp.float32)

    enc_output = jax.random.normal(k_enc, (B, S, d_model), dtype=jnp.float32)

    # streamed-weights path (v7x-style budget) ...
    out_stream, _ = decoder_forward(natural, packed, trg_seq, trg_mask, enc_output,
                                    src_mask=None, block_b=1, weights_resident=False)
    # ... and resident-weights + fat batch-tile path (v5e/v6e-style)
    out_res, _ = decoder_forward(natural, packed, trg_seq, trg_mask, enc_output,
                                 src_mask=None, block_b=2, weights_resident=True)
    out_stream = jax.block_until_ready(out_stream)
    out_res = jax.block_until_ready(out_res)

    assert out_stream.shape == (B, T, d_model)
    assert bool(jnp.all(jnp.isfinite(out_stream)))
    assert bool(jnp.all(jnp.isfinite(out_res)))
    # both kernel variants compute identical math
    assert bool(jnp.allclose(out_stream, out_res, atol=1e-4, rtol=1e-4))
    # loose check vs the exact-softmax f32 reference (kernel uses bf16 matmuls
    # and an approximate-reciprocal softmax normalization)
    ref = reference_forward(natural, trg_seq, trg_mask, enc_output)
    assert float(jnp.max(jnp.abs(out_stream - ref))) < 0.2

    print("KERNEL_OK")
</pallas_src>

<mosaic_0001>
module attributes {stable_mosaic.version = 11 : i64} {
  func.func @decoder_kernel(%arg0: i32, %arg1: i32, %arg2: memref<1x8x32xf32, #tpu.memory_space<vmem>>, %arg3: memref<1x1x32xf32, #tpu.memory_space<vmem>>, %arg4: memref<2x32xf32, #tpu.memory_space<vmem>>, %arg5: memref<1x8x8xi8, #tpu.memory_space<vmem>>, %arg6: memref<1x8x32xbf16, #tpu.memory_space<vmem>>, %arg7: memref<1x32x48xbf16, #tpu.memory_space<vmem>>, %arg8: memref<1x1x48xf32, #tpu.memory_space<vmem>>, %arg9: memref<1x16x32xbf16, #tpu.memory_space<vmem>>, %arg10: memref<1x32x16xbf16, #tpu.memory_space<vmem>>, %arg11: memref<1x1x16xf32, #tpu.memory_space<vmem>>, %arg12: memref<1x32x32xbf16, #tpu.memory_space<vmem>>, %arg13: memref<1x1x32xf32, #tpu.memory_space<vmem>>, %arg14: memref<1x16x32xbf16, #tpu.memory_space<vmem>>, %arg15: memref<1x32x64xbf16, #tpu.memory_space<vmem>>, %arg16: memref<1x1x64xf32, #tpu.memory_space<vmem>>, %arg17: memref<1x64x32xbf16, #tpu.memory_space<vmem>>, %arg18: memref<1x9x32xf32, #tpu.memory_space<vmem>>, %arg19: memref<1x8x32xf32, #tpu.memory_space<vmem>>) attributes {dimension_semantics = [#tpu.dimension_semantics<parallel>, #tpu.dimension_semantics<arbitrary>], iteration_bounds = array<i64: 2, 2>, scalar_prefetch = 0 : i64, scratch_operands = 0 : i64, tpu.core_type = #tpu.core_type<tc>, window_params = [{transform_indices = @transform_0, window_bounds = array<i64: 1, 8, 32>}, {transform_indices = @transform_1, window_bounds = array<i64: 1, 1, 32>}, {pipeline_mode = #tpu.pipeline_mode<synchronous>, transform_indices = @transform_2, window_bounds = array<i64: 2, 32>}, {transform_indices = @transform_3, window_bounds = array<i64: 1, 8, 8>}, {transform_indices = @transform_4, window_bounds = array<i64: 1, 8, 32>}, {transform_indices = @transform_5, window_bounds = array<i64: 1, 32, 48>}, {transform_indices = @transform_6, window_bounds = array<i64: 1, 1, 48>}, {transform_indices = @transform_7, window_bounds = array<i64: 1, 16, 32>}, {transform_indices = @transform_8, window_bounds = array<i64: 1, 32, 16>}, {transform_indices = @transform_9, window_bounds = array<i64: 1, 1, 16>}, {transform_indices = @transform_10, window_bounds = array<i64: 1, 32, 32>}, {transform_indices = @transform_11, window_bounds = array<i64: 1, 1, 32>}, {transform_indices = @transform_12, window_bounds = array<i64: 1, 16, 32>}, {transform_indices = @transform_13, window_bounds = array<i64: 1, 32, 64>}, {transform_indices = @transform_14, window_bounds = array<i64: 1, 1, 64>}, {transform_indices = @transform_15, window_bounds = array<i64: 1, 64, 32>}, {transform_indices = @transform_16, window_bounds = array<i64: 1, 9, 32>}, {transform_indices = @transform_17, window_bounds = array<i64: 1, 8, 32>}]} {
    %c0_i32 = arith.constant 0 : i32
    %0 = arith.cmpi eq, %arg1, %c0_i32 : i32
    %1 = arith.extui %0 : i1 to i32
    %c0_i32_0 = arith.constant 0 : i32
    %2 = arith.cmpi ne, %1, %c0_i32_0 : i32
    scf.if %2 {
      %c0_88 = arith.constant 0 : index
      %c0_89 = arith.constant 0 : index
      %236 = vector.load %arg4[%c0_88, %c0_89] : memref<2x32xf32, #tpu.memory_space<vmem>>, vector<2x32xf32>
      %c0_90 = arith.constant 0 : index
      %c0_91 = arith.constant 0 : index
      %c0_92 = arith.constant 0 : index
      %237 = vector.load %arg2[%c0_90, %c0_91, %c0_92] : memref<1x8x32xf32, #tpu.memory_space<vmem>>, vector<1x8x32xf32>
      %cst_93 = arith.constant 5.65685415 : f32
      %238 = vector.broadcast %cst_93 : f32 to vector<1x8x32xf32>
      %239 = arith.mulf %237, %238 : vector<1x8x32xf32>
      %c0_94 = arith.constant 0 : index
      %c0_95 = arith.constant 0 : index
      %c0_96 = arith.constant 0 : index
      %240 = vector.load %arg3[%c0_94, %c0_95, %c0_96] : memref<1x1x32xf32, #tpu.memory_space<vmem>>, vector<1x1x32xf32>
      %241 = vector.broadcast %240 : vector<1x1x32xf32> to vector<1x8x32xf32>
      %242 = arith.addf %239, %241 : vector<1x8x32xf32>
      %243 = vector.extract_strided_slice %236 {offsets = [0, 0], sizes = [1, 32], strides = [1, 1]} : vector<2x32xf32> to vector<1x32xf32>
      %244 = vector.extract_strided_slice %236 {offsets = [1, 0], sizes = [1, 32], strides = [1, 1]} : vector<2x32xf32> to vector<1x32xf32>
      %cst_97 = arith.constant dense<0.000000e+00> : vector<1x8xf32>
      %245 = vector.multi_reduction <add>, %242, %cst_97 [2] : vector<1x8x32xf32> to vector<1x8xf32>
      %246 = vector.shape_cast %245 : vector<1x8xf32> to vector<1x8x1xf32>
      %cst_98 = arith.constant 3.200000e+01 : f32
      %247 = vector.broadcast %cst_98 : f32 to vector<1x8x1xf32>
      %248 = arith.divf %246, %247 : vector<1x8x1xf32>
      %249 = vector.broadcast %248 : vector<1x8x1xf32> to vector<1x8x32xf32>
      %250 = arith.subf %242, %249 : vector<1x8x32xf32>
      %251 = vector.broadcast %248 : vector<1x8x1xf32> to vector<1x8x32xf32>
      %252 = arith.subf %242, %251 : vector<1x8x32xf32>
      %253 = arith.mulf %250, %252 : vector<1x8x32xf32>
      %cst_99 = arith.constant dense<0.000000e+00> : vector<1x8xf32>
      %254 = vector.multi_reduction <add>, %253, %cst_99 [2] : vector<1x8x32xf32> to vector<1x8xf32>
      %255 = vector.shape_cast %254 : vector<1x8xf32> to vector<1x8x1xf32>
      %cst_100 = arith.constant 3.200000e+01 : f32
      %256 = vector.broadcast %cst_100 : f32 to vector<1x8x1xf32>
      %257 = arith.divf %255, %256 : vector<1x8x1xf32>
      %258 = vector.broadcast %248 : vector<1x8x1xf32> to vector<1x8x32xf32>
      %259 = arith.subf %242, %258 : vector<1x8x32xf32>
      %cst_101 = arith.constant 9.99999997E-7 : f32
      %260 = vector.broadcast %cst_101 : f32 to vector<1x8x1xf32>
      %261 = arith.addf %257, %260 : vector<1x8x1xf32>
      %262 = math.rsqrt %261 : vector<1x8x1xf32>
      %263 = vector.broadcast %262 : vector<1x8x1xf32> to vector<1x8x32xf32>
      %264 = arith.mulf %259, %263 : vector<1x8x32xf32>
      %265 = vector.shape_cast %243 : vector<1x32xf32> to vector<1x1x32xf32>
      %266 = vector.broadcast %265 : vector<1x1x32xf32> to vector<1x8x32xf32>
      %267 = arith.mulf %264, %266 : vector<1x8x32xf32>
      %268 = vector.shape_cast %244 : vector<1x32xf32> to vector<1x1x32xf32>
      %269 = vector.broadcast %268 : vector<1x1x32xf32> to vector<1x8x32xf32>
      %270 = arith.addf %267, %269 : vector<1x8x32xf32>
      %c0_102 = arith.constant 0 : index
      %c0_103 = arith.constant 0 : index
      %c0_104 = arith.constant 0 : index
      %271 = vector.load %arg19[%c0_102, %c0_103, %c0_104] : memref<1x8x32xf32, #tpu.memory_space<vmem>>, vector<1x8x32xf32>
      tpu.vector_store %arg19[%c0_102, %c0_103, %c0_104], %270 {strides = array<i32>} : memref<1x8x32xf32, #tpu.memory_space<vmem>>, vector<1x8x32xf32>,
    } else {
    }
    %c0 = arith.constant 0 : index
    %c0_1 = arith.constant 0 : index
    %c0_2 = arith.constant 0 : index
    %3 = vector.load %arg19[%c0, %c0_1, %c0_2] : memref<1x8x32xf32, #tpu.memory_space<vmem>>, vector<1x8x32xf32>
    %4 = vector.shape_cast %3 : vector<1x8x32xf32> to vector<8x32xf32>
    %c0_3 = arith.constant 0 : index
    %c0_4 = arith.constant 0 : index
    %c0_5 = arith.constant 0 : index
    %5 = vector.load %arg5[%c0_3, %c0_4, %c0_5] : memref<1x8x8xi8, #tpu.memory_space<vmem>>, vector<1x8x8xi8>
    %c0_6 = arith.constant 0 : index
    %c0_7 = arith.constant 0 : index
    %c0_8 = arith.constant 0 : index
    %6 = vector.load %arg18[%c0_6, %c0_7, %c0_8] : memref<1x9x32xf32, #tpu.memory_space<vmem>>, vector<1x9x32xf32>
    %7 = vector.shape_cast %6 : vector<1x9x32xf32> to vector<9x32xf32>
    %8 = arith.truncf %4 : vector<8x32xf32> to vector<8x32xbf16>
    %c0_9 = arith.constant 0 : index
    %c0_10 = arith.constant 0 : index
    %c0_11 = arith.constant 0 : index
    %9 = vector.load %arg7[%c0_9, %c0_10, %c0_11] : memref<1x32x48xbf16, #tpu.memory_space<vmem>>, vector<1x32x48xbf16>
    %10 = vector.shape_cast %9 : vector<1x32x48xbf16> to vector<32x48xbf16>
    %cst = arith.constant dense<0.000000e+00> : vector<8x48xf32>
    %11 = tpu.matmul %8, %10, %cst {dimension_numbers = #tpu.dot_dimension_numbers<[1], [0], [0], [1], [0, 0, 1, 1], [], []>} : vector<8x32xbf16>, vector<32x48xbf16>, vector<8x48xf32> -> vector<8x48xf32>
    %c0_12 = arith.constant 0 : index
    %c0_13 = arith.constant 0 : index
    %c0_14 = arith.constant 0 : index
    %12 = vector.load %arg8[%c0_12, %c0_13, %c0_14] : memref<1x1x48xf32, #tpu.memory_space<vmem>>, vector<1x1x48xf32>
    %13 = vector.shape_cast %12 : vector<1x1x48xf32> to vector<1x48xf32>
    %14 = vector.broadcast %13 : vector<1x48xf32> to vector<8x48xf32>
    %15 = arith.addf %11, %14 : vector<8x48xf32>
    %16 = vector.extract_strided_slice %15 {offsets = [0, 0], sizes = [8, 16], strides = [1, 1]} : vector<8x48xf32> to vector<8x16xf32>
    %17 = vector.extract_strided_slice %15 {offsets = [0, 16], sizes = [8, 32], strides = [1, 1]} : vector<8x48xf32> to vector<8x32xf32>
    %c0_15 = arith.constant 0 : index
    %c0_16 = arith.constant 0 : index
    %c0_17 = arith.constant 0 : index
    %18 = vector.load %arg9[%c0_15, %c0_16, %c0_17] : memref<1x16x32xbf16, #tpu.memory_space<vmem>>, vector<1x16x32xbf16>
    %19 = vector.shape_cast %18 : vector<1x16x32xbf16> to vector<16x32xbf16>
    %20 = vector.extract_strided_slice %7 {offsets = [0, 0], sizes = [1, 32], strides = [1, 1]} : vector<9x32xf32> to vector<1x32xf32>
    %21 = vector.extract_strided_slice %7 {offsets = [1, 0], sizes = [1, 32], strides = [1, 1]} : vector<9x32xf32> to vector<1x32xf32>
    %22 = vector.extract_strided_slice %7 {offsets = [2, 0], sizes = [1, 32], strides = [1, 1]} : vector<9x32xf32> to vector<1x32xf32>
    %23 = arith.truncf %16 : vector<8x16xf32> to vector<8x16xbf16>
    %24 = vector.extract_strided_slice %17 {offsets = [0, 0], sizes = [8, 16], strides = [1, 1]} : vector<8x32xf32> to vector<8x16xf32>
    %25 = arith.truncf %24 : vector<8x16xf32> to vector<8x16xbf16>
    %26 = vector.extract_strided_slice %17 {offsets = [0, 16], sizes = [8, 16], strides = [1, 1]} : vector<8x32xf32> to vector<8x16xf32>
    %27 = arith.truncf %26 : vector<8x16xf32> to vector<8x16xbf16>
    %28 = vector.shape_cast %5 : vector<1x8x8xi8> to vector<8x8xi8>
    %c0_i8 = arith.constant 0 : i8
    %29 = vector.broadcast %c0_i8 : i8 to vector<8x8xi8>
    %30 = arith.cmpi ne, %28, %29 : vector<8x8xi8>
    %31 = vector.extract_strided_slice %23 {offsets = [0, 0], sizes = [8, 8], strides = [1, 1]} : vector<8x16xbf16> to vector<8x8xbf16>
    %32 = vector.extract_strided_slice %25 {offsets = [0, 0], sizes = [8, 8], strides = [1, 1]} : vector<8x16xbf16> to vector<8x8xbf16>
    %33 = tpu.transpose %32, [1, 0] : vector<8x8xbf16> -> vector<8x8xbf16>
    %cst_18 = arith.constant dense<0.000000e+00> : vector<8x8xf32>
    %34 = tpu.matmul %31, %33, %cst_18 {dimension_numbers = #tpu.dot_dimension_numbers<[1], [0], [0], [1], [0, 0, 1, 1], [], []>} : vector<8x8xbf16>, vector<8x8xbf16>, vector<8x8xf32> -> vector<8x8xf32>
    %cst_19 = arith.constant -1.000000e+09 : f32
    %35 = vector.broadcast %cst_19 : f32 to vector<8x8xf32>
    %36 = arith.select %30, %34, %35 : vector<8x8xi1>, vector<8x8xf32>
    %cst_20 = arith.constant dense<0xFF800000> : vector<8xf32>
    %37 = vector.multi_reduction <maximumf>, %36, %cst_20 [1] : vector<8x8xf32> to vector<8xf32>
    %38 = vector.shape_cast %37 : vector<8xf32> to vector<8x1xf32>
    %39 = vector.broadcast %38 : vector<8x1xf32> to vector<8x8xf32>
    %40 = arith.subf %36, %39 : vector<8x8xf32>
    %41 = math.exp %40 : vector<8x8xf32>
    %cst_21 = arith.constant dense<0.000000e+00> : vector<8xf32>
    %42 = vector.multi_reduction <add>, %41, %cst_21 [1] : vector<8x8xf32> to vector<8xf32>
    %43 = vector.shape_cast %42 : vector<8xf32> to vector<8x1xf32>
    %44 = tpu.reciprocal %43 {approx = true} : vector<8x1xf32> -> vector<8x1xf32>
    %45 = vector.broadcast %44 : vector<8x1xf32> to vector<8x8xf32>
    %46 = arith.mulf %41, %45 : vector<8x8xf32>
    %47 = arith.truncf %46 : vector<8x8xf32> to vector<8x8xbf16>
    %48 = vector.extract_strided_slice %27 {offsets = [0, 0], sizes = [8, 8], strides = [1, 1]} : vector<8x16xbf16> to vector<8x8xbf16>
    %cst_22 = arith.constant dense<0.000000e+00> : vector<8x8xf32>
    %49 = tpu.matmul %47, %48, %cst_22 {dimension_numbers = #tpu.dot_dimension_numbers<[1], [0], [0], [1], [0, 0, 1, 1], [], []>} : vector<8x8xbf16>, vector<8x8xbf16>, vector<8x8xf32> -> vector<8x8xf32>
    %50 = vector.extract_strided_slice %23 {offsets = [0, 8], sizes = [8, 8], strides = [1, 1]} : vector<8x16xbf16> to vector<8x8xbf16>
    %51 = vector.extract_strided_slice %25 {offsets = [0, 8], sizes = [8, 8], strides = [1, 1]} : vector<8x16xbf16> to vector<8x8xbf16>
    %52 = tpu.transpose %51, [1, 0] : vector<8x8xbf16> -> vector<8x8xbf16>
    %cst_23 = arith.constant dense<0.000000e+00> : vector<8x8xf32>
    %53 = tpu.matmul %50, %52, %cst_23 {dimension_numbers = #tpu.dot_dimension_numbers<[1], [0], [0], [1], [0, 0, 1, 1], [], []>} : vector<8x8xbf16>, vector<8x8xbf16>, vector<8x8xf32> -> vector<8x8xf32>
    %cst_24 = arith.constant -1.000000e+09 : f32
    %54 = vector.broadcast %cst_24 : f32 to vector<8x8xf32>
    %55 = arith.select %30, %53, %54 : vector<8x8xi1>, vector<8x8xf32>
    %cst_25 = arith.constant dense<0xFF800000> : vector<8xf32>
    %56 = vector.multi_reduction <maximumf>, %55, %cst_25 [1] : vector<8x8xf32> to vector<8xf32>
    %57 = vector.shape_cast %56 : vector<8xf32> to vector<8x1xf32>
    %58 = vector.broadcast %57 : vector<8x1xf32> to vector<8x8xf32>
    %59 = arith.subf %55, %58 : vector<8x8xf32>
    %60 = math.exp %59 : vector<8x8xf32>
    %cst_26 = arith.constant dense<0.000000e+00> : vector<8xf32>
    %61 = vector.multi_reduction <add>, %60, %cst_26 [1] : vector<8x8xf32> to vector<8xf32>
    %62 = vector.shape_cast %61 : vector<8xf32> to vector<8x1xf32>
    %63 = tpu.reciprocal %62 {approx = true} : vector<8x1xf32> -> vector<8x1xf32>
    %64 = vector.broadcast %63 : vector<8x1xf32> to vector<8x8xf32>
    %65 = arith.mulf %60, %64 : vector<8x8xf32>
    %66 = arith.truncf %65 : vector<8x8xf32> to vector<8x8xbf16>
    %67 = vector.extract_strided_slice %27 {offsets = [0, 8], sizes = [8, 8], strides = [1, 1]} : vector<8x16xbf16> to vector<8x8xbf16>
    %cst_27 = arith.constant dense<0.000000e+00> : vector<8x8xf32>
    %68 = tpu.matmul %66, %67, %cst_27 {dimension_numbers = #tpu.dot_dimension_numbers<[1], [0], [0], [1], [0, 0, 1, 1], [], []>} : vector<8x8xbf16>, vector<8x8xbf16>, vector<8x8xf32> -> vector<8x8xf32>
    %69 = tpu.concatenate %49, %68 in 1 : vector<8x8xf32>, vector<8x8xf32> -> vector<8x16xf32>
    %70 = arith.truncf %69 : vector<8x16xf32> to vector<8x16xbf16>
    %cst_28 = arith.constant dense<0.000000e+00> : vector<8x32xf32>
    %71 = tpu.matmul %70, %19, %cst_28 {dimension_numbers = #tpu.dot_dimension_numbers<[1], [0], [0], [1], [0, 0, 1, 1], [], []>} : vector<8x16xbf16>, vector<16x32xbf16>, vector<8x32xf32> -> vector<8x32xf32>
    %72 = vector.broadcast %20 : vector<1x32xf32> to vector<8x32xf32>
    %73 = arith.addf %71, %72 : vector<8x32xf32>
    %74 = arith.addf %73, %4 : vector<8x32xf32>
    %cst_29 = arith.constant dense<0.000000e+00> : vector<8xf32>
    %75 = vector.multi_reduction <add>, %74, %cst_29 [1] : vector<8x32xf32> to vector<8xf32>
    %76 = vector.shape_cast %75 : vector<8xf32> to vector<8x1xf32>
    %cst_30 = arith.constant 3.200000e+01 : f32
    %77 = vector.broadcast %cst_30 : f32 to vector<8x1xf32>
    %78 = arith.divf %76, %77 : vector<8x1xf32>
    %79 = vector.broadcast %78 : vector<8x1xf32> to vector<8x32xf32>
    %80 = arith.subf %74, %79 : vector<8x32xf32>
    %81 = vector.broadcast %78 : vector<8x1xf32> to vector<8x32xf32>
    %82 = arith.subf %74, %81 : vector<8x32xf32>
    %83 = arith.mulf %80, %82 : vector<8x32xf32>
    %cst_31 = arith.constant dense<0.000000e+00> : vector<8xf32>
    %84 = vector.multi_reduction <add>, %83, %cst_31 [1] : vector<8x32xf32> to vector<8xf32>
    %85 = vector.shape_cast %84 : vector<8xf32> to vector<8x1xf32>
    %cst_32 = arith.constant 3.200000e+01 : f32
    %86 = vector.broadcast %cst_32 : f32 to vector<8x1xf32>
    %87 = arith.divf %85, %86 : vector<8x1xf32>
    %88 = vector.broadcast %78 : vector<8x1xf32> to vector<8x32xf32>
    %89 = arith.subf %74, %88 : vector<8x32xf32>
    %cst_33 = arith.constant 9.99999997E-7 : f32
    %90 = vector.broadcast %cst_33 : f32 to vector<8x1xf32>
    %91 = arith.addf %87, %90 : vector<8x1xf32>
    %92 = math.rsqrt %91 : vector<8x1xf32>
    %93 = vector.broadcast %92 : vector<8x1xf32> to vector<8x32xf32>
    %94 = arith.mulf %89, %93 : vector<8x32xf32>
    %95 = vector.broadcast %21 : vector<1x32xf32> to vector<8x32xf32>
    %96 = arith.mulf %94, %95 : vector<8x32xf32>
    %97 = vector.broadcast %22 : vector<1x32xf32> to vector<8x32xf32>
    %98 = arith.addf %96, %97 : vector<8x32xf32>
    %99 = arith.truncf %98 : vector<8x32xf32> to vector<8x32xbf16>
    %c0_34 = arith.constant 0 : index
    %c0_35 = arith.constant 0 : index
    %c0_36 = arith.constant 0 : index
    %100 = vector.load %arg10[%c0_34, %c0_35, %c0_36] : memref<1x32x16xbf16, #tpu.memory_space<vmem>>, vector<1x32x16xbf16>
    %101 = vector.shape_cast %100 : vector<1x32x16xbf16> to vector<32x16xbf16>
    %cst_37 = arith.constant dense<0.000000e+00> : vector<8x16xf32>
    %102 = tpu.matmul %99, %101, %cst_37 {dimension_numbers = #tpu.dot_dimension_numbers<[1], [0], [0], [1], [0, 0, 1, 1], [], []>} : vector<8x32xbf16>, vector<32x16xbf16>, vector<8x16xf32> -> vector<8x16xf32>
    %c0_38 = arith.constant 0 : index
    %c0_39 = arith.constant 0 : index
    %c0_40 = arith.constant 0 : index
    %103 = vector.load %arg11[%c0_38, %c0_39, %c0_40] : memref<1x1x16xf32, #tpu.memory_space<vmem>>, vector<1x1x16xf32>
    %104 = vector.shape_cast %103 : vector<1x1x16xf32> to vector<1x16xf32>
    %105 = vector.broadcast %104 : vector<1x16xf32> to vector<8x16xf32>
    %106 = arith.addf %102, %105 : vector<8x16xf32>
    %c0_41 = arith.constant 0 : index
    %c0_42 = arith.constant 0 : index
    %c0_43 = arith.constant 0 : index
    %107 = vector.load %arg12[%c0_41, %c0_42, %c0_43] : memref<1x32x32xbf16, #tpu.memory_space<vmem>>, vector<1x32x32xbf16>
    %108 = vector.shape_cast %107 : vector<1x32x32xbf16> to vector<32x32xbf16>
    %c0_44 = arith.constant 0 : index
    %c0_45 = arith.constant 0 : index
    %c0_46 = arith.constant 0 : index
    %109 = vector.load %arg13[%c0_44, %c0_45, %c0_46] : memref<1x1x32xf32, #tpu.memory_space<vmem>>, vector<1x1x32xf32>
    %110 = vector.shape_cast %109 : vector<1x1x32xf32> to vector<1x32xf32>
    %c0_47 = arith.constant 0 : index
    %c0_48 = arith.constant 0 : index
    %c0_49 = arith.constant 0 : index
    %111 = vector.load %arg6[%c0_47, %c0_48, %c0_49] : memref<1x8x32xbf16, #tpu.memory_space<vmem>>, vector<1x8x32xbf16>
    %112 = vector.shape_cast %111 : vector<1x8x32xbf16> to vector<8x32xbf16>
    %cst_50 = arith.constant dense<0.000000e+00> : vector<8x32xf32>
    %113 = tpu.matmul %112, %108, %cst_50 {dimension_numbers = #tpu.dot_dimension_numbers<[1], [0], [0], [1], [0, 0, 1, 1], [], []>} : vector<8x32xbf16>, vector<32x32xbf16>, vector<8x32xf32> -> vector<8x32xf32>
    %114 = vector.broadcast %110 : vector<1x32xf32> to vector<8x32xf32>
    %115 = arith.addf %113, %114 : vector<8x32xf32>
    %c0_51 = arith.constant 0 : index
    %c0_52 = arith.constant 0 : index
    %c0_53 = arith.constant 0 : index
    %116 = vector.load %arg14[%c0_51, %c0_52, %c0_53] : memref<1x16x32xbf16, #tpu.memory_space<vmem>>, vector<1x16x32xbf16>
    %117 = vector.shape_cast %116 : vector<1x16x32xbf16> to vector<16x32xbf16>
    %118 = vector.extract_strided_slice %7 {offsets = [3, 0], sizes = [1, 32], strides = [1, 1]} : vector<9x32xf32> to vector<1x32xf32>
    %119 = vector.extract_strided_slice %7 {offsets = [4, 0], sizes = [1, 32], strides = [1, 1]} : vector<9x32xf32> to vector<1x32xf32>
    %120 = vector.extract_strided_slice %7 {offsets = [5, 0], sizes = [1, 32], strides = [1, 1]} : vector<9x32xf32> to vector<1x32xf32>
    %121 = arith.truncf %106 : vector<8x16xf32> to vector<8x16xbf16>
    %122 = vector.extract_strided_slice %115 {offsets = [0, 0], sizes = [8, 16], strides = [1, 1]} : vector<8x32xf32> to vector<8x16xf32>
    %123 = arith.truncf %122 : vector<8x16xf32> to vector<8x16xbf16>
    %124 = vector.extract_strided_slice %115 {offsets = [0, 16], sizes = [8, 16], strides = [1, 1]} : vector<8x32xf32> to vector<8x16xf32>
    %125 = arith.truncf %124 : vector<8x16xf32> to vector<8x16xbf16>
    %126 = vector.extract_strided_slice %121 {offsets = [0, 0], sizes = [8, 8], strides = [1, 1]} : vector<8x16xbf16> to vector<8x8xbf16>
    %127 = vector.extract_strided_slice %123 {offsets = [0, 0], sizes = [8, 8], strides = [1, 1]} : vector<8x16xbf16> to vector<8x8xbf16>
    %128 = tpu.transpose %127, [1, 0] : vector<8x8xbf16> -> vector<8x8xbf16>
    %cst_54 = arith.constant dense<0.000000e+00> : vector<8x8xf32>
    %129 = tpu.matmul %126, %128, %cst_54 {dimension_numbers = #tpu.dot_dimension_numbers<[1], [0], [0], [1], [0, 0, 1, 1], [], []>} : vector<8x8xbf16>, vector<8x8xbf16>, vector<8x8xf32> -> vector<8x8xf32>
    %cst_55 = arith.constant dense<0xFF800000> : vector<8xf32>
    %130 = vector.multi_reduction <maximumf>, %129, %cst_55 [1] : vector<8x8xf32> to vector<8xf32>
    %131 = vector.shape_cast %130 : vector<8xf32> to vector<8x1xf32>
    %132 = vector.broadcast %131 : vector<8x1xf32> to vector<8x8xf32>
    %133 = arith.subf %129, %132 : vector<8x8xf32>
    %134 = math.exp %133 : vector<8x8xf32>
    %cst_56 = arith.constant dense<0.000000e+00> : vector<8xf32>
    %135 = vector.multi_reduction <add>, %134, %cst_56 [1] : vector<8x8xf32> to vector<8xf32>
    %136 = vector.shape_cast %135 : vector<8xf32> to vector<8x1xf32>
    %137 = tpu.reciprocal %136 {approx = true} : vector<8x1xf32> -> vector<8x1xf32>
    %138 = vector.broadcast %137 : vector<8x1xf32> to vector<8x8xf32>
    %139 = arith.mulf %134, %138 : vector<8x8xf32>
    %140 = arith.truncf %139 : vector<8x8xf32> to vector<8x8xbf16>
    %141 = vector.extract_strided_slice %125 {offsets = [0, 0], sizes = [8, 8], strides = [1, 1]} : vector<8x16xbf16> to vector<8x8xbf16>
    %cst_57 = arith.constant dense<0.000000e+00> : vector<8x8xf32>
    %142 = tpu.matmul %140, %141, %cst_57 {dimension_numbers = #tpu.dot_dimension_numbers<[1], [0], [0], [1], [0, 0, 1, 1], [], []>} : vector<8x8xbf16>, vector<8x8xbf16>, vector<8x8xf32> -> vector<8x8xf32>
    %143 = vector.extract_strided_slice %121 {offsets = [0, 8], sizes = [8, 8], strides = [1, 1]} : vector<8x16xbf16> to vector<8x8xbf16>
    %144 = vector.extract_strided_slice %123 {offsets = [0, 8], sizes = [8, 8], strides = [1, 1]} : vector<8x16xbf16> to vector<8x8xbf16>
    %145 = tpu.transpose %144, [1, 0] : vector<8x8xbf16> -> vector<8x8xbf16>
    %cst_58 = arith.constant dense<0.000000e+00> : vector<8x8xf32>
    %146 = tpu.matmul %143, %145, %cst_58 {dimension_numbers = #tpu.dot_dimension_numbers<[1], [0], [0], [1], [0, 0, 1, 1], [], []>} : vector<8x8xbf16>, vector<8x8xbf16>, vector<8x8xf32> -> vector<8x8xf32>
    %cst_59 = arith.constant dense<0xFF800000> : vector<8xf32>
    %147 = vector.multi_reduction <maximumf>, %146, %cst_59 [1] : vector<8x8xf32> to vector<8xf32>
    %148 = vector.shape_cast %147 : vector<8xf32> to vector<8x1xf32>
    %149 = vector.broadcast %148 : vector<8x1xf32> to vector<8x8xf32>
    %150 = arith.subf %146, %149 : vector<8x8xf32>
    %151 = math.exp %150 : vector<8x8xf32>
    %cst_60 = arith.constant dense<0.000000e+00> : vector<8xf32>
    %152 = vector.multi_reduction <add>, %151, %cst_60 [1] : vector<8x8xf32> to vector<8xf32>
    %153 = vector.shape_cast %152 : vector<8xf32> to vector<8x1xf32>
    %154 = tpu.reciprocal %153 {approx = true} : vector<8x1xf32> -> vector<8x1xf32>
    %155 = vector.broadcast %154 : vector<8x1xf32> to vector<8x8xf32>
    %156 = arith.mulf %151, %155 : vector<8x8xf32>
    %157 = arith.truncf %156 : vector<8x8xf32> to vector<8x8xbf16>
    %158 = vector.extract_strided_slice %125 {offsets = [0, 8], sizes = [8, 8], strides = [1, 1]} : vector<8x16xbf16> to vector<8x8xbf16>
    %cst_61 = arith.constant dense<0.000000e+00> : vector<8x8xf32>
    %159 = tpu.matmul %157, %158, %cst_61 {dimension_numbers = #tpu.dot_dimension_numbers<[1], [0], [0], [1], [0, 0, 1, 1], [], []>} : vector<8x8xbf16>, vector<8x8xbf16>, vector<8x8xf32> -> vector<8x8xf32>
    %160 = tpu.concatenate %142, %159 in 1 : vector<8x8xf32>, vector<8x8xf32> -> vector<8x16xf32>
    %161 = arith.truncf %160 : vector<8x16xf32> to vector<8x16xbf16>
    %cst_62 = arith.constant dense<0.000000e+00> : vector<8x32xf32>
    %162 = tpu.matmul %161, %117, %cst_62 {dimension_numbers = #tpu.dot_dimension_numbers<[1], [0], [0], [1], [0, 0, 1, 1], [], []>} : vector<8x16xbf16>, vector<16x32xbf16>, vector<8x32xf32> -> vector<8x32xf32>
    %163 = vector.broadcast %118 : vector<1x32xf32> to vector<8x32xf32>
    %164 = arith.addf %162, %163 : vector<8x32xf32>
    %165 = arith.addf %164, %98 : vector<8x32xf32>
    %cst_63 = arith.constant dense<0.000000e+00> : vector<8xf32>
    %166 = vector.multi_reduction <add>, %165, %cst_63 [1] : vector<8x32xf32> to vector<8xf32>
    %167 = vector.shape_cast %166 : vector<8xf32> to vector<8x1xf32>
    %cst_64 = arith.constant 3.200000e+01 : f32
    %168 = vector.broadcast %cst_64 : f32 to vector<8x1xf32>
    %169 = arith.divf %167, %168 : vector<8x1xf32>
    %170 = vector.broadcast %169 : vector<8x1xf32> to vector<8x32xf32>
    %171 = arith.subf %165, %170 : vector<8x32xf32>
    %172 = vector.broadcast %169 : vector<8x1xf32> to vector<8x32xf32>
    %173 = arith.subf %165, %172 : vector<8x32xf32>
    %174 = arith.mulf %171, %173 : vector<8x32xf32>
    %cst_65 = arith.constant dense<0.000000e+00> : vector<8xf32>
    %175 = vector.multi_reduction <add>, %174, %cst_65 [1] : vector<8x32xf32> to vector<8xf32>
    %176 = vector.shape_cast %175 : vector<8xf32> to vector<8x1xf32>
    %cst_66 = arith.constant 3.200000e+01 : f32
    %177 = vector.broadcast %cst_66 : f32 to vector<8x1xf32>
    %178 = arith.divf %176, %177 : vector<8x1xf32>
    %179 = vector.broadcast %169 : vector<8x1xf32> to vector<8x32xf32>
    %180 = arith.subf %165, %179 : vector<8x32xf32>
    %cst_67 = arith.constant 9.99999997E-7 : f32
    %181 = vector.broadcast %cst_67 : f32 to vector<8x1xf32>
    %182 = arith.addf %178, %181 : vector<8x1xf32>
    %183 = math.rsqrt %182 : vector<8x1xf32>
    %184 = vector.broadcast %183 : vector<8x1xf32> to vector<8x32xf32>
    %185 = arith.mulf %180, %184 : vector<8x32xf32>
    %186 = vector.broadcast %119 : vector<1x32xf32> to vector<8x32xf32>
    %187 = arith.mulf %185, %186 : vector<8x32xf32>
    %188 = vector.broadcast %120 : vector<1x32xf32> to vector<8x32xf32>
    %189 = arith.addf %187, %188 : vector<8x32xf32>
    %190 = arith.truncf %189 : vector<8x32xf32> to vector<8x32xbf16>
    %c0_68 = arith.constant 0 : index
    %c0_69 = arith.constant 0 : index
    %c0_70 = arith.constant 0 : index
    %191 = vector.load %arg15[%c0_68, %c0_69, %c0_70] : memref<1x32x64xbf16, #tpu.memory_space<vmem>>, vector<1x32x64xbf16>
    %192 = vector.shape_cast %191 : vector<1x32x64xbf16> to vector<32x64xbf16>
    %cst_71 = arith.constant dense<0.000000e+00> : vector<8x64xf32>
    %193 = tpu.matmul %190, %192, %cst_71 {dimension_numbers = #tpu.dot_dimension_numbers<[1], [0], [0], [1], [0, 0, 1, 1], [], []>} : vector<8x32xbf16>, vector<32x64xbf16>, vector<8x64xf32> -> vector<8x64xf32>
    %c0_72 = arith.constant 0 : index
    %c0_73 = arith.constant 0 : index
    %c0_74 = arith.constant 0 : index
    %194 = vector.load %arg16[%c0_72, %c0_73, %c0_74] : memref<1x1x64xf32, #tpu.memory_space<vmem>>, vector<1x1x64xf32>
    %195 = vector.shape_cast %194 : vector<1x1x64xf32> to vector<1x64xf32>
    %196 = vector.broadcast %195 : vector<1x64xf32> to vector<8x64xf32>
    %197 = arith.addf %193, %196 : vector<8x64xf32>
    %cst_75 = arith.constant 0.000000e+00 : f32
    %198 = vector.broadcast %cst_75 : f32 to vector<8x64xf32>
    %199 = arith.maximumf %197, %198 : vector<8x64xf32>
    %200 = arith.truncf %199 : vector<8x64xf32> to vector<8x64xbf16>
    %c0_76 = arith.constant 0 : index
    %c0_77 = arith.constant 0 : index
    %c0_78 = arith.constant 0 : index
    %201 = vector.load %arg17[%c0_76, %c0_77, %c0_78] : memref<1x64x32xbf16, #tpu.memory_space<vmem>>, vector<1x64x32xbf16>
    %202 = vector.shape_cast %201 : vector<1x64x32xbf16> to vector<64x32xbf16>
    %cst_79 = arith.constant dense<0.000000e+00> : vector<8x32xf32>
    %203 = tpu.matmul %200, %202, %cst_79 {dimension_numbers = #tpu.dot_dimension_numbers<[1], [0], [0], [1], [0, 0, 1, 1], [], []>} : vector<8x64xbf16>, vector<64x32xbf16>, vector<8x32xf32> -> vector<8x32xf32>
    %204 = vector.extract_strided_slice %7 {offsets = [6, 0], sizes = [1, 32], strides = [1, 1]} : vector<9x32xf32> to vector<1x32xf32>
    %205 = vector.broadcast %204 : vector<1x32xf32> to vector<8x32xf32>
    %206 = arith.addf %203, %205 : vector<8x32xf32>
    %207 = arith.addf %206, %189 : vector<8x32xf32>
    %208 = vector.extract_strided_slice %7 {offsets = [7, 0], sizes = [1, 32], strides = [1, 1]} : vector<9x32xf32> to vector<1x32xf32>
    %209 = vector.extract_strided_slice %7 {offsets = [8, 0], sizes = [1, 32], strides = [1, 1]} : vector<9x32xf32> to vector<1x32xf32>
    %cst_80 = arith.constant dense<0.000000e+00> : vector<8xf32>
    %210 = vector.multi_reduction <add>, %207, %cst_80 [1] : vector<8x32xf32> to vector<8xf32>
    %211 = vector.shape_cast %210 : vector<8xf32> to vector<8x1xf32>
    %cst_81 = arith.constant 3.200000e+01 : f32
    %212 = vector.broadcast %cst_81 : f32 to vector<8x1xf32>
    %213 = arith.divf %211, %212 : vector<8x1xf32>
    %214 = vector.broadcast %213 : vector<8x1xf32> to vector<8x32xf32>
    %215 = arith.subf %207, %214 : vector<8x32xf32>
    %216 = vector.broadcast %213 : vector<8x1xf32> to vector<8x32xf32>
    %217 = arith.subf %207, %216 : vector<8x32xf32>
    %218 = arith.mulf %215, %217 : vector<8x32xf32>
    %cst_82 = arith.constant dense<0.000000e+00> : vector<8xf32>
    %219 = vector.multi_reduction <add>, %218, %cst_82 [1] : vector<8x32xf32> to vector<8xf32>
    %220 = vector.shape_cast %219 : vector<8xf32> to vector<8x1xf32>
    %cst_83 = arith.constant 3.200000e+01 : f32
    %221 = vector.broadcast %cst_83 : f32 to vector<8x1xf32>
    %222 = arith.divf %220, %221 : vector<8x1xf32>
    %223 = vector.broadcast %213 : vector<8x1xf32> to vector<8x32xf32>
    %224 = arith.subf %207, %223 : vector<8x32xf32>
    %cst_84 = arith.constant 9.99999997E-7 : f32
    %225 = vector.broadcast %cst_84 : f32 to vector<8x1xf32>
    %226 = arith.addf %222, %225 : vector<8x1xf32>
    %227 = math.rsqrt %226 : vector<8x1xf32>
    %228 = vector.broadcast %227 : vector<8x1xf32> to vector<8x32xf32>
    %229 = arith.mulf %224, %228 : vector<8x32xf32>
    %230 = vector.broadcast %208 : vector<1x32xf32> to vector<8x32xf32>
    %231 = arith.mulf %229, %230 : vector<8x32xf32>
    %232 = vector.broadcast %209 : vector<1x32xf32> to vector<8x32xf32>
    %233 = arith.addf %231, %232 : vector<8x32xf32>
    %234 = vector.shape_cast %233 : vector<8x32xf32> to vector<1x8x32xf32>
    %c0_85 = arith.constant 0 : index
    %c0_86 = arith.constant 0 : index
    %c0_87 = arith.constant 0 : index
    %235 = vector.load %arg19[%c0_85, %c0_86, %c0_87] : memref<1x8x32xf32, #tpu.memory_space<vmem>>, vector<1x8x32xf32>
    tpu.vector_store %arg19[%c0_85, %c0_86, %c0_87], %234 {strides = array<i32>} : memref<1x8x32xf32, #tpu.memory_space<vmem>>, vector<1x8x32xf32>,
    return
  }
  func.func @transform_0(%arg0: i32, %arg1: i32) -> (i32, i32, i32) {
    %c0_i32 = arith.constant 0 : i32
    %c0_i32_0 = arith.constant 0 : i32
    %c0_i32_1 = arith.constant 0 : i32
    return %arg0, %c0_i32, %c0_i32_0 : i32, i32, i32
  }
  func.func @transform_1(%arg0: i32, %arg1: i32) -> (i32, i32, i32) {
    %c0_i32 = arith.constant 0 : i32
    %c0_i32_0 = arith.constant 0 : i32
    %c0_i32_1 = arith.constant 0 : i32
    return %arg0, %c0_i32, %c0_i32_0 : i32, i32, i32
  }
  func.func @transform_2(%arg0: i32, %arg1: i32) -> (i32, i32) {
    %c0_i32 = arith.constant 0 : i32
    %c0_i32_0 = arith.constant 0 : i32
    %c0_i32_1 = arith.constant 0 : i32
    return %c0_i32, %c0_i32_0 : i32, i32
  }
  func.func @transform_3(%arg0: i32, %arg1: i32) -> (i32, i32, i32) {
    %c0_i32 = arith.constant 0 : i32
    %c0_i32_0 = arith.constant 0 : i32
    %c0_i32_1 = arith.constant 0 : i32
    return %arg0, %c0_i32, %c0_i32_0 : i32, i32, i32
  }
  func.func @transform_4(%arg0: i32, %arg1: i32) -> (i32, i32, i32) {
    %c0_i32 = arith.constant 0 : i32
    %c0_i32_0 = arith.constant 0 : i32
    %c0_i32_1 = arith.constant 0 : i32
    return %arg0, %c0_i32, %c0_i32_0 : i32, i32, i32
  }
  func.func @transform_5(%arg0: i32, %arg1: i32) -> (i32, i32, i32) {
    %c0_i32 = arith.constant 0 : i32
    %c0_i32_0 = arith.constant 0 : i32
    %c0_i32_1 = arith.constant 0 : i32
    return %arg1, %c0_i32, %c0_i32_0 : i32, i32, i32
  }
  func.func @transform_6(%arg0: i32, %arg1: i32) -> (i32, i32, i32) {
    %c0_i32 = arith.constant 0 : i32
    %c0_i32_0 = arith.constant 0 : i32
    %c0_i32_1 = arith.constant 0 : i32
    return %arg1, %c0_i32, %c0_i32_0 : i32, i32, i32
  }
  func.func @transform_7(%arg0: i32, %arg1: i32) -> (i32, i32, i32) {
    %c0_i32 = arith.constant 0 : i32
    %c0_i32_0 = arith.constant 0 : i32
    %c0_i32_1 = arith.constant 0 : i32
    return %arg1, %c0_i32, %c0_i32_0 : i32, i32, i32
  }
  func.func @transform_8(%arg0: i32, %arg1: i32) -> (i32, i32, i32) {
    %c0_i32 = arith.constant 0 : i32
    %c0_i32_0 = arith.constant 0 : i32
    %c0_i32_1 = arith.constant 0 : i32
    return %arg1, %c0_i32, %c0_i32_0 : i32, i32, i32
  }
  func.func @transform_9(%arg0: i32, %arg1: i32) -> (i32, i32, i32) {
    %c0_i32 = arith.constant 0 : i32
    %c0_i32_0 = arith.constant 0 : i32
    %c0_i32_1 = arith.constant 0 : i32
    return %arg1, %c0_i32, %c0_i32_0 : i32, i32, i32
  }
  func.func @transform_10(%arg0: i32, %arg1: i32) -> (i32, i32, i32) {
    %c0_i32 = arith.constant 0 : i32
    %c0_i32_0 = arith.constant 0 : i32
    %c0_i32_1 = arith.constant 0 : i32
    return %arg1, %c0_i32, %c0_i32_0 : i32, i32, i32
  }
  func.func @transform_11(%arg0: i32, %arg1: i32) -> (i32, i32, i32) {
    %c0_i32 = arith.constant 0 : i32
    %c0_i32_0 = arith.constant 0 : i32
    %c0_i32_1 = arith.constant 0 : i32
    return %arg1, %c0_i32, %c0_i32_0 : i32, i32, i32
  }
  func.func @transform_12(%arg0: i32, %arg1: i32) -> (i32, i32, i32) {
    %c0_i32 = arith.constant 0 : i32
    %c0_i32_0 = arith.constant 0 : i32
    %c0_i32_1 = arith.constant 0 : i32
    return %arg1, %c0_i32, %c0_i32_0 : i32, i32, i32
  }
  func.func @transform_13(%arg0: i32, %arg1: i32) -> (i32, i32, i32) {
    %c0_i32 = arith.constant 0 : i32
    %c0_i32_0 = arith.constant 0 : i32
    %c0_i32_1 = arith.constant 0 : i32
    return %arg1, %c0_i32, %c0_i32_0 : i32, i32, i32
  }
  func.func @transform_14(%arg0: i32, %arg1: i32) -> (i32, i32, i32) {
    %c0_i32 = arith.constant 0 : i32
    %c0_i32_0 = arith.constant 0 : i32
    %c0_i32_1 = arith.constant 0 : i32
    return %arg1, %c0_i32, %c0_i32_0 : i32, i32, i32
  }
  func.func @transform_15(%arg0: i32, %arg1: i32) -> (i32, i32, i32) {
    %c0_i32 = arith.constant 0 : i32
    %c0_i32_0 = arith.constant 0 : i32
    %c0_i32_1 = arith.constant 0 : i32
    return %arg1, %c0_i32, %c0_i32_0 : i32, i32, i32
  }
  func.func @transform_16(%arg0: i32, %arg1: i32) -> (i32, i32, i32) {
    %c0_i32 = arith.constant 0 : i32
    %c0_i32_0 = arith.constant 0 : i32
    %c0_i32_1 = arith.constant 0 : i32
    return %arg1, %c0_i32, %c0_i32_0 : i32, i32, i32
  }
  func.func @transform_17(%arg0: i32, %arg1: i32) -> (i32, i32, i32) {
    %c0_i32 = arith.constant 0 : i32
    %c0_i32_0 = arith.constant 0 : i32
    %c0_i32_1 = arith.constant 0 : i32
    return %arg0, %c0_i32, %c0_i32_0 : i32, i32, i32
  }
}

</mosaic_0001>

<bundles_post_ra>
// kernel: tpu_custom_call.1
= control target key start
LH: loop header
LB: loop body
LE: loop exit
PB: predicated region body
PF: predicated region fallthrough
CT: control target
= control target key end

     0   :  { %s3272_s0 = inlined_call_operand.vmem [shape: f32[2,8,32], index: 0, kind: input, shape index: {}]   ;;  %s3273_s1 = inlined_call_operand.vmem [shape: f32[2,1,32], index: 1, kind: input, shape index: {}]   ;;  %s3274_s2 = inlined_call_operand.hbm [shape: f32[2,32], index: 2, kind: input, shape index: {}]   ;;  %s3275_s3 = inlined_call_operand.hbm [shape: s8[2,8,8], index: 3, kind: input, shape index: {}]   ;;  %s3276_s4 = inlined_call_operand.vmem [shape: bf16[2,8,32], index: 4, kind: input, shape index: {}]   ;;  %s3277_s5 = inlined_call_operand.vmem [shape: bf16[2,32,48], index: 5, kind: input, shape index: {}]   ;;  %s3278_s6 = inlined_call_operand.vmem [shape: f32[2,1,48], index: 6, kind: input, shape index: {}]   ;;  %s3279_s7 = inlined_call_operand.vmem [shape: bf16[2,16,32], index: 7, kind: input, shape index: {}]   ;;  %s3280_s8 = inlined_call_operand.vmem [shape: bf16[2,32,16], index: 8, kind: input, shape index: {}]   ;;  %s3281_s9 = inlined_call_operand.vmem [shape: f32[2,1,16], index: 9, kind: input, shape index: {}]   ;;  %s3282_s10 = inlined_call_operand.vmem [shape: bf16[2,32,32], index: 10, kind: input, shape index: {}]   ;;  %s3283_s11 = inlined_call_operand.vmem [shape: f32[2,1,32], index: 11, kind: input, shape index: {}]   ;;  %s3284_s12 = inlined_call_operand.vmem [shape: bf16[2,16,32], index: 12, kind: input, shape index: {}]   ;;  %s3285_s13 = inlined_call_operand.vmem [shape: bf16[2,32,64], index: 13, kind: input, shape index: {}]   ;;  %s3286_s14 = inlined_call_operand.vmem [shape: f32[2,1,64], index: 14, kind: input, shape index: {}]   ;;  %s3287_s15 = inlined_call_operand.vmem [shape: bf16[2,64,32], index: 15, kind: input, shape index: {}]   ;;  %s3288_s16 = inlined_call_operand.vmem [shape: f32[2,9,32], index: 16, kind: input, shape index: {}]   ;;  %s3289_s17 = inlined_call_operand.hbm [shape: f32[2,8,32], index: 17, kind: output, shape index: {}]  }
   0x1   :  { %3310 = sst [smem:[#allocation27_spill]] %s3272_s0 }
   0x2   :  { %3311 = sst [smem:[#allocation28_spill]] %s3273_s1 }
   0x3   :  { %3312 = sst [smem:[#allocation29_spill]] %s3274_s2 }
   0x4   :  { %3313 = sst [smem:[#allocation30_spill]] %s3275_s3 }
   0x5   :  { %3314 = sst [smem:[#allocation31_spill]] %s3276_s4 }
   0x6   :  { %3315 = sst [smem:[#allocation32_spill]] %s3277_s5 }
   0x7   :  { %3316 = sst [smem:[#allocation33_spill]] %s3279_s7 }
   0x8   :  { %3317 = sst [smem:[#allocation34_spill]] %s3280_s8 }
   0x9   :  { %3318 = sst [smem:[#allocation35_spill]] %s3281_s9 }
   0xa   :  { %3319 = sst [smem:[#allocation36_spill]] %s3282_s10 }
   0xb   :  { %3320 = sst [smem:[#allocation37_spill]] %s3283_s11 }
   0xc   :  { %3321 = sst [smem:[#allocation38_spill]] %s3284_s12 }
   0xd   :  { %3322 = sst [smem:[#allocation39_spill]] %s3285_s13 }
   0xe   :  { %3323 = sst [smem:[#allocation40_spill]] %s3286_s14 }
   0xf   :  { %3324 = sst [smem:[#allocation41_spill]] %s3287_s15 }
  0x10   :  { %3325 = sst [smem:[#allocation42_spill]] %s3288_s16 }
  0x11   :  { %3326 = sst [smem:[#allocation43_spill]] %s3289_s17 }
  0x12   :  { %22 = vsyncpa [#allocation3], 0 }
  0x13   :  { %23 = vsyncpa [#allocation6], 0 }
  0x14   :  { %25 = vsyncpa [#allocation6 + $0x1], 0 }
  0x15   :  { %26 = vsyncpa [#allocation4], 0 }
  0x16   :  { %28 = vsyncpa [#allocation4 + $0x1], 0  ;;  %s2787_s24 = smov 0   ;;  %s2789_s25 = smov 0  }
  0x17   :  { %s2791_s26 = smov 0   ;;  %s2793_s27 = smov 0  }
  0x18   :  { %s2795_s28 = smov 0   ;;  %s2797_s29 = smov 0  }
  0x19   :  { %s2799_s0 = smov 0   ;;  %s2801_s30 = smov 0  }
  0x1a LB: > { %3327 = sst [smem:[#allocation11_spill]] %s2655_s24  ;;  %s2169_s18 = sadd.s32 4294967295, %s2683_s30   ;;  %s2683_s30 = sphi %s2801_s30, %s34_s30   ;;  %s2679_s0 = sphi %s2799_s0, %s3393_s0   ;;  %s2675_s29 = sphi %s2797_s29, %s3392_s29   ;;  %s2671_s28 = sphi %s2795_s28, %s3391_s28   ;;  %s2667_s27 = sphi %s2793_s27, %s3390_s27   ;;  %s2663_s26 = sphi %s2791_s26, %s3389_s26   ;;  %s2659_s25 = sphi %s2789_s25, %s3388_s25   ;;  %s2655_s24 = sphi %s2787_s24, %s3387_s24  }
  0x1b   : > { %3328 = sst [smem:[#allocation12_spill]] %s2659_s25  ;;  %s2170_s19 = sadd.s32 4294967294, %s2683_s30  }
  0x1c   : > { %3329 = sst [smem:[#allocation13_spill]] %s2663_s26  ;;  %p139_p0 = scmp.ne.s32.totalorder %s2659_s25, %s2655_s24 }
  0x1d   : > { %3330 = sst [smem:[#allocation14_spill]] %s2671_s28  ;;  %p2831_p1 = scmp.eq.s32.totalorder %s2169_s18, 0 }
  0x1e   : > { %3331 = sst [smem:[#allocation15_spill]] %s2675_s29  ;;  %p2835_p2 = scmp.eq.s32.totalorder %s2169_s18, 3 }
  0x1f   : > { %3332 = sst [smem:[#allocation16_spill]] %s2679_s0  ;;  %p507_p3 = scmp.eq.s32.totalorder %s2170_s19, 3 }
  0x20   : > { %3333 = sst [smem:[#allocation17_spill]] %s2683_s30  ;;  %p2841_p4 = por %p2831_p1, %p139_p0 }
  0x21   : > { %s3334_s1 = scalar_select %p2831_p1, 1, 0 }
  0x22   : > { %s3335_s20 = scalar_select %p2835_p2, 1, 0 }
  0x23   : > { %s3336_s21 = scalar_select %p2841_p4, 1, 0 }
  0x24   : > { %p2171_p5 = scmp.ge.s32.totalorder %s2683_s30, 1  ;;  %p2846_p6 = por %p507_p3, %p139_p0 }
  0x25   : > { %p514_p7 = scmp.lt.s32.totalorder %s2683_s30, 5  ;;  %s2685_s18 = smov [#allocation2]  }
  0x26   : > { %s3337_s22 = scalar_select %p2846_p6, 1, 0 }
  0x27   : > { %p2851_p8 = pnand %p2171_p5, %p514_p7  ;;  %s527_s24 = sshll.u32 %s2685_s18, 4  ;;  %s528_s24 = int_to_ptr.vmem [resolvable:$true] %s527_s24 }
  0x28   : > { %3338 = sst [smem:[#allocation18_spill]] %s3337_s22  ;;  %s43_s17 = sadd.s32 1, %s2675_s29 }
  0x29   : > { %s3339_s23 = scalar_select %p2851_p8, 1, 0 }
  0x2a   : > { %p2395_p9 = pneg %p2851_p8  ;;  %s3341_s2 = sld [smem:[#allocation29_spill]] }
  0x2c   : > { %p2859_p10 = pnand %p2395_p9, %p2831_p1 }
  0x2e   : > { %p2525_p12 = pneg %p2859_p10 }
  0x30   : > { %s2523_s15 = scalar_lea.hbm %s3341_s2, 32 }
  0x31   : > { %p2524_p11 = scmp.ne.s32.totalorder %s3341_s2, %s2523_s15  ;;  %p2530_p3 = scmp.lt.u32.totalorder %s2523_s15, %s3341_s2 }
  0x33   : > { %p2526_p13 = pnand %p2525_p12, %p2524_p11 }
  0x35   : > { %p2527_p0 = pneg %p2526_p13 }
  0x37   : > { %p2532_p5 = pnand %p2530_p3, %p2527_p0 }
  0x39   : > { %2535 = shalt.err (!%p2532_p5)
}
  0x3a   : > { %s2536_s11 = scalar_lea.vmem %s528_s24, 32  ;;  %p2544_p4 = scmp.lt.s32.totalorder %s528_s24, %s528_s24 }
  0x3b   : > { %p2537_p7 = scmp.ne.s32.totalorder %s528_s24, %s2536_s11  ;;  %p2545_p1 = scmp.lt.s32.totalorder %s2536_s11, %s2536_s11 }
  0x3d   : > { %p2539_p9 = pnand %p2537_p7, %p2525_p12  ;;  %p2546_p8 = por %p2545_p1, %p2544_p4 }
  0x3f   : > { %p2540_p6 = pneg %p2539_p9 }
  0x41   : > { %p2547_p2 = pnand %p2546_p8, %p2540_p6 }
  0x43   : > { %2550 = shalt.err (!%p2547_p2)
}
  0x44   : > { %2398 = dma.hbm_to_vmem [thread:$0]  (!%p2859_p10), %s3341_s2, 32, %s528_s24, [#allocation3]  }
  0x45   : > { %p44_p11 = scmp.ge.s32.totalorder %s43_s17, 2  ;;  %s46_s11 = sadd.s32 1, %s2679_s0 }
  0x46   : > { %s126_s12 = sadd.s32 1, %s2663_s26  ;;  %p133_p1 = scmp.ne.s32.totalorder %s2663_s26, %s2659_s25 }
  0x47   : > { %s3395_s17 = smov (%p44_p11, %s43_s17), 0  ;;  %s3397_s11 = smov (!%p44_p11, %s46_s11), %s2679_s0 }
  0x48   : > { %3342 = sst [smem:[#allocation19_spill]] %s3395_s17  ;;  %p134_p2 = scmp.eq.s32.totalorder %s2683_s30, 0 }
  0x49   : > { %p3343_p4 = scmp.ne.s32.totalorder %s3335_s20, 0  ;;  %p48_p8 = scmp.ge.s32.totalorder %s3397_s11, 2 }
  0x4a   : > { %p2408_p12 = scmp.lt.s32.totalorder %s2683_s30, 4  ;;  %p135_p13 = por %p134_p2, %p133_p1 }
  0x4b   : > { %p2890_p6 = por %p3343_p4, %p133_p1  ;;  %s551_s16 = sand.u32 1, %s2663_s26  }
  0x4c   : > { %s3399_s11 = smov (%p48_p8, %s3397_s11), 0  ;;  %s2174_s24 = sshll.u32 %s551_s16, 1 }
  0x4d   : > { %s3344_s15 = scalar_select %p2890_p6, 1, 0 }
  0x4e   : > { %3346 = sst [smem:[#allocation21_spill]] %s3399_s11  ;;  %s123_s22 = ssub.s32 %s2679_s0, %s3399_s11 }
  0x4f   : > { %3345 = sst [smem:[#allocation20_spill]] %s3344_s15  ;;  %p124_p10 = scmp.eq.s32.totalorder %s123_s22, 0 }
  0x50   : > { %s2175_s19 = sshll.u32 %s2679_s0, 5  ;;  %s3347_s3 = sld [smem:[#allocation30_spill]] }
  0x51   : > { %s555_s14 = scalar_lea.vmem [#allocation5], %s2174_s24  ;;  %p2913_p0 = pnand %p2408_p12, %p135_p13 }
  0x52   : > { %s562_s2 = sshll.u32 %s555_s14, 4  ;;  %s552_s22 = scalar_lea.sflag [#allocation6], %s551_s16  ;;  %s2909_s2 = int_to_ptr.vmem [resolvable:$true] %s562_s2 }
  0x53   : > { %s2907_s17 = scalar_select %p124_p10, %s2663_s26, %s126_s12  }
  0x54   : > { %p2553_p5 = pneg %p2913_p0 }
  0x55   : > { %3348 = sst [smem:[#allocation22_spill]] %s2907_s17 }
  0x56   : > { %s2904_s20 = scalar_lea.hbm %s3347_s3, %s2175_s19  ;;  %s2556_s18 = scalar_lea.hbm %s3347_s3, 64 }
  0x57   : > { %s2551_s19 = scalar_lea.hbm %s2904_s20, 32  ;;  %p2557_p11 = scmp.lt.u32.totalorder %s2904_s20, %s3347_s3 }
  0x58   : > { %p2552_p3 = scmp.ne.s32.totalorder %s2904_s20, %s2551_s19  ;;  %p2558_p1 = scmp.lt.u32.totalorder %s2556_s18, %s2551_s19 }
  0x59   : > { %p2560_p4 = scmp.lt.u32.totalorder %s2551_s19, %s2904_s20 }
  0x5a   : > { %p2554_p7 = pnand %p2553_p5, %p2552_p3  ;;  %p2559_p2 = por %p2558_p1, %p2557_p11 }
  0x5c   : > { %p2555_p9 = pneg %p2554_p7  ;;  %p2561_p8 = por %p2560_p4, %p2559_p2 }
  0x5e   : > { %p2562_p12 = pnand %p2561_p8, %p2555_p9 }
  0x60   : > { %2565 = shalt.err (!%p2562_p12)
}
  0x61   : > { %s2566_s16 = scalar_lea.vmem %s2909_s2, 32  ;;  %s2686_s12 = smov [#allocation5]  }
  0x62   : > { %p2567_p13 = scmp.ne.s32.totalorder %s2909_s2, %s2566_s16  ;;  %s2571_s24 = sshll.u32 %s2686_s12, 4  ;;  %s2572_s24 = int_to_ptr.vmem [resolvable:$false] %s2571_s24 }
  0x63   : > { %s2573_s13 = scalar_lea.vmem %s2572_s24, 64  ;;  %p2574_p7 = scmp.lt.s32.totalorder %s2909_s2, %s2572_s24 }
  0x64   : > { %p2569_p10 = pnand %p2567_p13, %p2553_p5  ;;  %p2575_p11 = scmp.lt.s32.totalorder %s2573_s13, %s2566_s16 }
  0x66   : > { %p2570_p3 = pneg %p2569_p10  ;;  %p2576_p1 = por %p2575_p11, %p2574_p7 }
  0x68   : > { %p2577_p2 = pnand %p2576_p1, %p2570_p3 }
  0x6a   : > { %2580 = shalt.err (!%p2577_p2)
}
  0x6b   : > { %2402 = dma.hbm_to_vmem [thread:$0]  (!%p2913_p0), %s2904_s20, 32, %s2909_s2, %s552_s22  }
  0x6c   : > { %p3350_p9 = scmp.ne.s32.totalorder %s3339_s23, 0 }
  0x6e   : > { %666 = sbr.rel (%p3350_p9) target bundleno = 4684 (0x124c), region = 88 }
  0x75   : > { %p3351_p5 = scmp.ne.s32.totalorder %s3334_s1, 0 }
  0x77   : > { %2642 = dma.done.wait (%p3351_p5), [#allocation3], 32  }
  0x78   : > { %2644 = vsyncadd (%p3351_p5), [#allocation3], 4294967264  ;;  %s2949_s19 = sand.u32 1, %s2659_s25   ;;  %p3353_p0 = scmp.ne.s32.totalorder %s3336_s21, 0 }
  0x79   : > { %3352 = sst [smem:[#allocation23_spill]] %s2949_s19  ;;  %s2178_s18 = sshll.u32 %s2949_s19, 1 }
  0x7a   : > { %s673_s11 = scalar_lea.sflag [#allocation6], %s2949_s19  ;;  %s2953_s14 = scalar_lea.vmem [#allocation5], %s2178_s18 }
  0x7b   : > { %2646 = dma.done.wait (%p3353_p0), %s673_s11, 32  }
  0x7c   : > { %2648 = vsyncadd (%p3353_p0), %s673_s11, 4294967264  ;;  %s2179_s2 = sshll.u32 %s2949_s19, 3  ;;  %p790_p4 = scmp.lt.s32.totalorder %s2671_s28, 1 }
  0x7d   : > { %p801_p8 = scmp.lt.s32.totalorder %s2667_s27, 1  ;;  %s3354_s16 = sld [smem:[#allocation28_spill]] }
  0x7e   : > { %s791_s1 = scalar_select %p790_p4, %s2671_s28, 1 }
  0x7f   : > { %s2964_s23 = scalar_select %p801_p8, %s2667_s27, 1 }
  0x80   : > { %s2180_s20 = sshll.u32 %s791_s1, 3  ;;  %s3355_s18 = sld [smem:[#allocation27_spill]] }
  0x81   : > { %s2181_s3 = sshll.u32 %s791_s1, 2  ;;  %s3356_s4 = sld [smem:[#allocation31_spill]] }
  0x82   : > { %s2238_s26 = sshll.u32 %s2964_s23, 4  ;;  %s3358_s5 = sld [smem:[#allocation32_spill]] }
  0x83   : > { %s796_s12 = scalar_lea.vmem %s3354_s16, %s791_s1  ;;  %s2239_s19 = sshll.u32 %s2964_s23, 3 }
  0x84   : > { %s3359_s8 = sld [smem:[#allocation34_spill]]  ;;  %s3361_s7 = sld [smem:[#allocation33_spill]] }
  0x85   : > { %s3363_s10 = sld [smem:[#allocation36_spill]]  ;;  %s3366_s28 = sld [smem:[#allocation38_spill]] }
  0x86   : > { %s793_s11 = scalar_lea.vmem %s3355_s18, %s2180_s20  ;;  %s3368_s25 = sld [smem:[#allocation40_spill]] }
  0x87   : > { %s2975_s17 = scalar_lea.vmem %s3356_s4, %s2181_s3  ;;  %s2244_s30 = sshll.u32 %s2964_s23, 5 }
  0x88   : > { %3357 = sst [smem:[#allocation24_spill]] %s2975_s17  ;;  %s2981_s15 = scalar_lea.vmem %s3358_s5, %s2238_s26 }
  0x89   : > { %s3365_s5 = sld [smem:[#allocation37_spill]]  ;;  %p2198_p12 = scmp.ne.s32.totalorder %s2667_s27, 0 }
  0x8a   : > { %s2991_s1 = scalar_lea.vmem %s3359_s8, %s2238_s26  ;;  %s2996_s3 = scalar_lea.vmem %s3361_s7, %s2239_s19  ;;  %v861_v0 = vld [vmem:[%s793_s11] sm:$0xff] (!%p2198_p12)  ;;  %vm871_vm0 = vcmask (!%p2198_p12), 261120   ;;  %v886_v12 = vlaneseq (!%p2198_p12) }
  0x8b   : > { %3360 = sst [smem:[#allocation25_spill]] %s2991_s1  ;;  %s3005_s22 = scalar_lea.vmem %s3363_s10, %s2238_s26  ;;  %v2199_v1 = vld [vmem:[%s796_s12] ss:$0 sm:$0xff] (!%p2198_p12)  ;;  %v862_v2 = vmul.f32 (!%p2198_p12), 5.656854, %v861_v0 }
  0x8c   : > { %3364 = sst [smem:[#allocation26_spill]] %s3005_s22  ;;  %s3014_s1 = scalar_lea.vmem %s3366_s28, %s2239_s19  ;;  %v887_v14 = vshrl.u32 (!%p2198_p12), %v886_v12, 7  ;;  %v860_v16 = vld [vmem:[#allocation2] sm:$0x3] (!%p2198_p12) }
  0x8d   : > { %s3367_s7 = sld [smem:[#allocation39_spill]]  ;;  %s842_s4 = scalar_lea.vmem %s3368_s25, %s2964_s23  ;;  %v870_v3 = vadd.f32 (!%p2198_p12), %v2199_v1, %v862_v2 }
  0x8e   : > { %s3369_s22 = sld [smem:[#allocation41_spill]]  ;;  %s3370_s8 = sld [smem:[#allocation42_spill]]  ;;  %v888_v15 = vsub.s32 (!%p2198_p12), 0, %v887_v14  ;;  %v893_v17 = vsub.s32 (!%p2198_p12), 1, %v887_v14 }
  0x8f   : > { %s829_s24 = scalar_lea.vmem %s3365_s5, %s2964_s23  ;;  %s3036_s19 = scalar_lea.vmem [#allocation7], %s2179_s2  ;;  %v872_v4 = vsel (!%p2198_p12), %vm871_vm0, %v870_v3, 0.0 }
  0x90   : > { %859 = sbr.rel (%p2198_p12) target bundleno = 457 (0x1c9), region = 100  ;;  %873 = vadd.xlane.f32.xlu0 (!%p2198_p12), %v872_v4  ;;  %v889_v18 = vrot.slane (!%p2198_p12), %v860_v16, %v888_v15  ;;  %v894_v21 = vrot.slane (!%p2198_p12), %v860_v16, %v893_v17 }
  0x93   : > { %s3019_s17 = scalar_lea.vmem %s3367_s7, %s2238_s26 }
  0x94   : > { %s3029_s16 = scalar_lea.vmem %s3369_s22, %s2244_s30  ;;  %s3034_s28 = scalar_lea.vmem %s3370_s8, %s2238_s26 }
 0x11d   : > { %v874_v5 = vpop.xlane.xlu0 %873 }
 0x11e   : > { %v876_v6 = vmul.f32 0.03125, %v874_v5 }
 0x120   : > { %v877_v7 = vsub.f32 %v870_v3, %v876_v6 }
 0x122   : > { %v878_v8 = vmul.f32 %v877_v7, %v877_v7 }
 0x124   : > { %v879_v9 = vsel %vm871_vm0, %v878_v8, 0.0 }
 0x125   : > { %880 = vadd.xlane.f32.xlu0 %v879_v9 }
 0x1b2   : > { %v881_v10 = vpop.xlane.xlu0 %880 }
 0x1b3   : > { %v882_v11 = vmul.f32 0.03125, %v881_v10 }
 0x1b5   : > { %v883_v13 = vadd.f32 1e-06, %v882_v11 }
 0x1b7   : > { %2485 = vrsqrt.f32 %v883_v13 }
 0x1c1   : > { %v2486_v19 = vpop.eup %2485 }
 0x1c2   : > { %v885_v20 = vmul.f32 %v2486_v19, %v877_v7 }
 0x1c4   : > { %v890_v22 = vmul.f32 %v889_v18, %v885_v20 }
 0x1c6   : > { %v895_v23 = vadd.f32 %v894_v21, %v890_v22 }
 0x1c8   : > { %896 = vst.msk [vmem:[%s3036_s19] sm:$0xff] %vm871_vm0, %v895_v23 }
 0x1c9 PF: > { %v2487_v24 = vld [vmem:[%s2981_s15] sm:$0xff]   ;;  %v2687_v25 = vmov 0.0   ;;  %v2488_v26 = vld [vmem:[%s2981_s15 + $0x8] sm:$0xff]   ;;  %vm2688_vm1 = vmmov 0   ;;  %vm925_vm2 = vcmask 261120   ;;  %s3371_s10 = scalar_lea.vmem %s3278_s6, %s2964_s23  ;;  %s2689_s26 = smov 120  }
 0x1ca   : > { %2283 = vmatprep.subr.bf16.mxu1 %v2687_v25  ;;  %2297 = vmatprep.subr.bf16.mxu0 %v2687_v25  ;;  %v2200_v29 = vld [vmem:[%s3371_s10] ss:$0 sm:$0xff]  ;;  %s2690_s27 = smov 112   ;;  %s2691_s15 = smov 104   ;;  %vm976_vm3 = vcmask 64512   ;;  %v2692_v42 = vmov 0  }
 0x1cb   : > { %2284 = vmatpush3.bf16.msra.mxu1 %v2487_v24  ;;  %2287 = vmatprep.mubr.msk.bf16.mxu1 %vm2688_vm1, %v2687_v25  ;;  %v898_v41 = vld [vmem:[%s2953_s14] sm:$0x3]  ;;  %s2693_s14 = smov 96   ;;  %s2694_s2 = smov 88   ;;  %vm1044_vm6 = vcmask 1043456   ;;  %vm1215_vm7 = vcmask 130048  }
 0x1cc   : > { %2285 = vmatprep.subr.bf16.mxu1 %v2687_v25  ;;  %2299 = vmatprep.mubr.msk.bf16.mxu0 %vm2688_vm1, %v2687_v25  ;;  %vm972_vm4 = vnez %v898_v41  ;;  %v2489_v15 = vld [vmem:[%s2996_s3] sm:$0xff]   ;;  %s2695_s12 = smov 8   ;;  %s3372_s11 = sld [smem:[#allocation26_spill]]  ;;  %vm1828_vm8 = vcmask 523264  }
 0x1cd   : > { %v1023_v43 = vsel %vm972_vm4, 16843009, %v2692_v42  ;;  %s3373_s3 = sld [smem:[#allocation24_spill]]  ;;  %s3374_s25 = sld [smem:[#allocation25_spill]] }
 0x1ce   : > { %v1024_v44 = vunpack.c.0.s8 %v1023_v43  ;;  %s3376_s18 = sld [smem:[#allocation35_spill]]  ;;  %s1911_s21 = sshll.u32 %s3036_s19, 4  ;;  %s3218_s21 = int_to_ptr.vmem [resolvable:$true] %s1911_s21 }
 0x1cf   : > { %v3050_v27 = vld [vmem:[%s3036_s19] sm:$0xff]  ;;  %2286 = vmatpush3.bf16.msra.mxu1 %v2488_v26  ;;  %s3382_s9 = sld [smem:[#allocation43_spill]] }
 0x1d0   : > { %v901_v28 = vpack.c.bf16 %v3050_v27, %v3050_v27  ;;  %2291 = vmatprep.subr.bf16.mxu1 %v2687_v25  ;;  %vm1025_vm5 = vcmp.ne.s32.totalorder %v1024_v44, 0 }
 0x1d2   : > { %2288 = vmatmul.mubr.msk.bf16.vlgmr.msra.gmra.mrb[0].mxu1 %vm925_vm2, %v901_v28 }
 0x1d3   : > { %2293 = vmatprep.mubr.msk.bf16.mxu1 %vm2688_vm1, %v2687_v25 }
 0x1d4   : > { %s3377_s30 = scalar_lea.vmem %s3376_s18, %s2964_s23  ;;  %s3379_s23 = sld [smem:[#allocation14_spill]] }
 0x1da   : > { %s2235_s5 = sshll.u32 %s3379_s23, 7 }
 0x1db   : > { %s3216_s10 = scalar_lea.hbm %s3382_s9, %s2235_s5 }
 0x2a5   : > { %v963_v30 = vpop.f32.mrb[0].mxu1 }
 0x2a6   : > { %v964_v31 = vadd.f32 %v2200_v29, %v963_v30  ;;  %v2289_v32 = vpop.f32.mrb[1].mxu1  ;;  %v1205_v29 = vlaneseq }
 0x2a7   : > { %v966_v33 = vpop.f32.mrb[2].mxu1  ;;  %v3105_v32 = vld [vmem:[%s3034_s28] sm:$0xff] }
 0x2a8   : > { %v971_v34 = vpack.c.bf16 %v964_v31, %v964_v31  ;;  %v2290_v35 = vpop.f32.mrb[3].mxu1  ;;  %v3101_v30 = vshrl.u32 %v1205_v29, 7 }
 0x2aa   : > { %1088 = vrot.lane.b32.xlu1 %v971_v34, %s2689_s26  ;;  %974 = vrot.lane.b32.xlu0 %v971_v34, %s2690_s27  ;;  %v1207_v31 = vsub.s32 0, %v3101_v30 }
 0x2ac   : > { %v1208_v33 = vrot.slane %v3105_v32, %v1207_v31 }
 0x2ae   : > { %1090 = vrot.lane.b32.xlu0 %v971_v34, %s2691_s15 }
 0x31c   : > { %v975_v36 = vpop.permute.xlu0 %974  ;;  %v1089_v40 = vpop.permute.xlu1 %1088 }
 0x31d   : > { %v981_v37 = vsel %vm976_vm3, %v975_v36, 0 }
 0x31e   : > { %2292 = vmatpush3.bf16.xpose.msra.mxu1 %v981_v37 }
 0x31f   : > { %2303 = vmatprep.subr.bf16.mxu1 %v2687_v25 }
 0x320   : > { %v1091_v38 = vpop.permute.xlu0 %1090 }
 0x321   : > { %v1096_v39 = vsel %vm976_vm3, %v1091_v38, 0 }
 0x325   : > { %2294 = vmatmul.mubr.msk.bf16.vlgmr.msra.gmra.mrb[4].mxu1 %vm976_vm3, %v971_v34 }
 0x326   : > { %2304 = vmatpush3.bf16.xpose.msra.mxu1 %v1096_v39  ;;  %2305 = vmatprep.mubr.msk.bf16.mxu1 %vm2688_vm1, %v2687_v25 }
 0x327   : > { %2315 = vmatprep.subr.bf16.mxu1 %v2687_v25 }
 0x32d   : > { %2306 = vmatmul.mubr.msk.bf16.vlgmr.msra.gmra.mrb[8].mxu1 %vm976_vm3, %v1089_v40 }
 0x32e   : > { %2317 = vmatprep.mubr.msk.bf16.mxu1 %vm2688_vm1, %v2687_v25  ;;  %2316 = vmatpush3.bf16.msra.mxu1 %v2489_v15 }
 0x32f   : > { %2329 = vmatprep.subr.bf16.mxu1 %v2687_v25 }
 0x3f8   : > { %v1017_v45 = vpop.f32.mrb[4].mxu1 }
 0x3f9   : > { %v1026_v46 = vsel %vm1025_vm5, %v1017_v45, -1e+09  ;;  %v2295_v47 = vpop.f32.mrb[5].mxu1 }
 0x3fa   : > { %v1020_v48 = vpop.f32.mrb[6].mxu1  ;;  %v1027_v49 = vsel %vm976_vm3, %v1026_v46, -inf  ;;  %v2491_v47 = vld [vmem:[%s3372_s11 + $0x8] sm:$0xff]  }
 0x3fb   : > { %1028 = vmax.xlane.f32.xlu1 %v1027_v49  ;;  %v2296_v50 = vpop.f32.mrb[7].mxu1  ;;  %v2492_v48 = vld [vmem:[%s3374_s25] sm:$0xff]   ;;  %v2493_v49 = vld [vmem:[%s3374_s25 + $0x8] sm:$0xff]  }
 0x400   : > { %v1132_v51 = vpop.f32.mrb[8].mxu1 }
 0x401   : > { %v1138_v52 = vsel %vm1025_vm5, %v1132_v51, -1e+09  ;;  %v2307_v53 = vpop.f32.mrb[9].mxu1 }
 0x402   : > { %v1135_v54 = vpop.f32.mrb[10].mxu1  ;;  %v1139_v55 = vsel %vm976_vm3, %v1138_v52, -inf  ;;  %v1276_v53 = vsub.s32 1, %v3101_v30 }
 0x403   : > { %1140 = vmax.xlane.f32.xlu0 %v1139_v55  ;;  %v2308_v56 = vpop.f32.mrb[11].mxu1  ;;  %v1281_v54 = vsub.s32 2, %v3101_v30 }
 0x404   : > { %v1277_v55 = vrot.slane %v3105_v32, %v1276_v53 }
 0x488   : > { %v1029_v57 = vpop.xlane.xlu1 %1028 }
 0x489   : > { %v1030_v58 = vsub.f32 %v1026_v46, %v1029_v57  ;;  %v2490_v46 = vld [vmem:[%s3372_s11] sm:$0xff]  }
 0x48b   : > { %v1031_v59 = vmul.f32 1.442695, %v1030_v58  ;;  %v1282_v58 = vrot.slane %v3105_v32, %v1281_v54 }
 0x48d   : > { %2501 = vpow2.f32 %v1031_v59 }
 0x490   : > { %v1141_v60 = vpop.xlane.xlu0 %1140 }
 0x491   : > { %v1142_v61 = vsub.f32 %v1138_v52, %v1141_v60 }
 0x493   : > { %v1143_v62 = vmul.f32 1.442695, %v1142_v61 }
 0x495   : > { %2503 = vpow2.f32 %v1143_v62  ;;  %v2214_v62 = vld [vmem:[%s829_s24] ss:$0 sm:$0xff] }
 0x497   : > { %v2502_v63 = vpop.eup %2501 }
 0x498   : > { %v1033_v0 = vsel %vm976_vm3, %v2502_v63, 0.0 }
 0x499   : > { %1034 = vadd.xlane.f32.xlu0 %v1033_v0 }
 0x49f   : > { %v2504_v1 = vpop.eup %2503 }
 0x4a0   : > { %v1145_v2 = vsel %vm976_vm3, %v2504_v1, 0.0 }
 0x4a1   : > { %1146 = vadd.xlane.f32.xlu1 %v1145_v2 }
 0x4af   : > { %1039 = vrot.lane.b32.xlu0 %v971_v34, %s2693_s14 }
 0x4b2   : > { %1151 = vrot.lane.b32.xlu1 %v971_v34, %s2694_s2 }
 0x526   : > { %v1035_v3 = vpop.xlane.xlu0 %1034 }
 0x527   : > { %2505 = vrcp.f32 %v1035_v3 }
 0x52a   : > { %v1040_v4 = vpop.permute.xlu0 %1039 }
 0x52b   : > { %v1046_v5 = vsel %vm1044_vm6, %v1040_v4, 0 }
 0x52c   : > { %2298 = vmatpush3.bf16.msra.mxu0 %v1046_v5 }
 0x52d   : > { %2309 = vmatprep.subr.bf16.mxu0 %v2687_v25 }
 0x52e   : > { %v1147_v6 = vpop.xlane.xlu1 %1146 }
 0x52f   : > { %2507 = vrcp.f32 %v1147_v6  ;;  %v2210_v6 = vld [vmem:[%s3377_s30] ss:$0 sm:$0xff] }
 0x531   : > { %v2506_v7 = vpop.eup %2505 }
 0x532   : > { %v1037_v8 = vmul.f32 %v2506_v7, %v2502_v63  ;;  %v1152_v9 = vpop.permute.xlu1 %1151 }
 0x533   : > { %v1157_v11 = vsel %vm1044_vm6, %v1152_v9, 0 }
 0x534   : > { %v1038_v10 = vpack.c.bf16 %v1037_v8, %v1037_v8 }
 0x536   : > { %2300 = vmatmul.mubr.msk.bf16.vlgmr.msra.gmra.mrb[0].mxu0 %vm976_vm3, %v1038_v10 }
 0x537   : > { %2310 = vmatpush3.bf16.msra.mxu0 %v1157_v11  ;;  %2311 = vmatprep.mubr.msk.bf16.mxu0 %vm2688_vm1, %v2687_v25 }
 0x538   : > { %2321 = vmatprep.subr.bf16.mxu0 %v2687_v25 }
 0x539   : > { %v2508_v12 = vpop.eup %2507 }
 0x53a   : > { %v1149_v13 = vmul.f32 %v2508_v12, %v2504_v1 }
 0x53c   : > { %v1150_v14 = vpack.c.bf16 %v1149_v13, %v1149_v13 }
 0x53e   : > { %2312 = vmatmul.mubr.msk.bf16.vlgmr.msra.gmra.mrb[4].mxu0 %vm976_vm3, %v1150_v14 }
 0x53f   : > { %2325 = vmatprep.mubr.msk.bf16.mxu0 %vm2688_vm1, %v2687_v25  ;;  %2322 = vmatpush3.bf16.msra.mxu0 %v2492_v48 }
 0x540   : > { %2323 = vmatprep.subr.bf16.mxu0 %v2687_v25 }
 0x543   : > { %2324 = vmatpush3.bf16.msra.mxu0 %v2493_v49 }
 0x544   : > { %2337 = vmatprep.subr.bf16.mxu0 %v2687_v25 }
 0x609   : > { %v1082_v16 = vpop.f32.mrb[0].mxu0 }
 0x60a   : > { %v2301_v17 = vpop.f32.mrb[1].mxu0 }
 0x60b   : > { %v1085_v18 = vpop.f32.mrb[2].mxu0 }
 0x60c   : > { %v2302_v19 = vpop.f32.mrb[3].mxu0 }
 0x611   : > { %v1193_v20 = vpop.f32.mrb[4].mxu0 }
 0x612   : > { %1200 = vrot.lane.b32.xlu1 %v1193_v20, %s2695_s12  ;;  %v2313_v21 = vpop.f32.mrb[5].mxu0 }
 0x613   : > { %v1196_v22 = vpop.f32.mrb[6].mxu0 }
 0x614   : > { %v2314_v23 = vpop.f32.mrb[7].mxu0 }
 0x684   : > { %v1201_v24 = vpop.permute.xlu1 %1200 }
 0x685   : > { %v1203_v26 = vsel %vm976_vm3, %v1082_v16, %v1201_v24 }
 0x686   : > { %v1204_v28 = vpack.c.bf16 %v1203_v26, %v1203_v26 }
 0x688   : > { %2318 = vmatmul.mubr.msk.bf16.vlgmr.msra.gmra.mrb[12].mxu1 %vm1215_vm7, %v1204_v28 }
 0x689   : > { %2333 = vmatprep.mubr.msk.bf16.mxu1 %vm2688_vm1, %v2687_v25  ;;  %2330 = vmatpush3.bf16.msra.mxu1 %v2490_v46 }
 0x68a   : > { %2331 = vmatprep.subr.bf16.mxu1 %v2687_v25 }
 0x68d   : > { %2332 = vmatpush3.bf16.msra.mxu1 %v2491_v47 }
 0x68e   : > { %2343 = vmatprep.subr.bf16.mxu1 %v2687_v25 }
 0x75b   : > { %v1253_v34 = vpop.f32.mrb[12].mxu1 }
 0x75c   : > { %v1254_v35 = vadd.f32 %v1253_v34, %v1208_v33  ;;  %v2319_v36 = vpop.f32.mrb[13].mxu1 }
 0x75d   : > { %v1256_v37 = vpop.f32.mrb[14].mxu1 }
 0x75e   : > { %v2320_v38 = vpop.f32.mrb[15].mxu1  ;;  %v1259_v39 = vadd.f32 %v1254_v35, %v3050_v27  ;;  %v1356_v27 = vld [vmem:[%s3373_s3] sm:$0xf] }
 0x75f   : > { %2334 = vmatmul.mubr.msk.bf16.vlgmr.msra.gmra.mrb[16].mxu1 %vm925_vm2, %v1356_v27 }
 0x760   : > { %v1260_v40 = vsel %vm925_vm2, %v1259_v39, 0.0  ;;  %2345 = vmatprep.mubr.msk.bf16.mxu1 %vm2688_vm1, %v2687_v25 }
 0x761   : > { %1261 = vadd.xlane.f32.xlu0 %v1260_v40 }
 0x7ee   : > { %v1262_v41 = vpop.xlane.xlu0 %1261 }
 0x7ef   : > { %v1264_v42 = vmul.f32 0.03125, %v1262_v41 }
 0x7f1   : > { %v1265_v43 = vsub.f32 %v1259_v39, %v1264_v42 }
 0x7f3   : > { %v1266_v44 = vmul.f32 %v1265_v43, %v1265_v43 }
 0x7f5   : > { %v1267_v45 = vsel %vm925_vm2, %v1266_v44, 0.0 }
 0x7f6   : > { %1268 = vadd.xlane.f32.xlu1 %v1267_v45 }
 0x832   : > { %v1412_v63 = vpop.f32.mrb[16].mxu1 }
 0x833   : > { %v1413_v0 = vadd.f32 %v2214_v62, %v1412_v63  ;;  %v2335_v1 = vpop.f32.mrb[17].mxu1 }
 0x834   : > { %v1415_v2 = vpop.f32.mrb[18].mxu1 }
 0x835   : > { %v1421_v3 = vpack.c.bf16 %v1413_v0, %v1413_v0  ;;  %v2336_v4 = vpop.f32.mrb[19].mxu1  ;;  %v1648_v0 = vsub.s32 3, %v3101_v30 }
 0x837   : > { %1532 = vrot.lane.b32.xlu0 %v1421_v3, %s2689_s26  ;;  %v1426_v5 = vsel %vm976_vm3, %v1421_v3, 0  ;;  %v1649_v1 = vrot.slane %v3105_v32, %v1648_v0 }
 0x883   : > { %v1269_v50 = vpop.xlane.xlu1 %1268 }
 0x884   : > { %v1270_v51 = vmul.f32 0.03125, %v1269_v50 }
 0x886   : > { %v1271_v52 = vadd.f32 1e-06, %v1270_v51  ;;  %v2494_v51 = vld [vmem:[%s3014_s1] sm:$0xff]  }
 0x888   : > { %2509 = vrsqrt.f32 %v1271_v52 }
 0x892   : > { %v2510_v56 = vpop.eup %2509 }
 0x893   : > { %v1273_v57 = vmul.f32 %v2510_v56, %v1265_v43 }
 0x895   : > { %v1278_v59 = vmul.f32 %v1277_v55, %v1273_v57 }
 0x897   : > { %v3127_v60 = vadd.f32 %v1282_v58, %v1278_v59 }
 0x899   : > { %v1284_v61 = vpack.c.bf16 %v3127_v60, %v3127_v60 }
 0x89b   : > { %2326 = vmatmul.mubr.msk.bf16.vlgmr.msra.gmra.mrb[8].mxu0 %vm925_vm2, %v1284_v61 }
 0x89c   : > { %2339 = vmatprep.mubr.msk.bf16.mxu0 %vm2688_vm1, %v2687_v25  ;;  %2338 = vmatpush3.bf16.xpose.msra.mxu0 %v1426_v5 }
 0x89d   : > { %2349 = vmatprep.subr.bf16.mxu0 %v2687_v25 }
 0x8a9   : > { %v1533_v8 = vpop.permute.xlu0 %1532 }
 0x8aa   : > { %v1538_v14 = vsel %vm976_vm3, %v1533_v8, 0 }
 0x96e   : > { %v1345_v7 = vpop.f32.mrb[8].mxu0 }
 0x96f   : > { %v1346_v9 = vadd.f32 %v2210_v6, %v1345_v7  ;;  %v2327_v10 = vpop.f32.mrb[9].mxu0 }
 0x970   : > { %v1348_v11 = vpop.f32.mrb[10].mxu0 }
 0x971   : > { %v1420_v12 = vpack.c.bf16 %v1346_v9, %v1346_v9  ;;  %v2328_v13 = vpop.f32.mrb[11].mxu0 }
 0x973   : > { %1530 = vrot.lane.b32.xlu1 %v1420_v12, %s2689_s26  ;;  %2340 = vmatmul.mubr.msk.bf16.vlgmr.msra.gmra.mrb[12].mxu0 %vm976_vm3, %v1420_v12 }
 0x974   : > { %2350 = vmatpush3.bf16.xpose.msra.mxu0 %v1538_v14  ;;  %2351 = vmatprep.mubr.msk.bf16.mxu0 %vm2688_vm1, %v2687_v25  ;;  %v2495_v14 = vld [vmem:[%s3019_s17] sm:$0xff]  }
 0x975   : > { %2361 = vmatprep.subr.bf16.mxu0 %v2687_v25 }
 0x9e5   : > { %v1531_v15 = vpop.permute.xlu1 %1530 }
 0x9e6   : > { %2352 = vmatmul.mubr.msk.bf16.vlgmr.msra.gmra.mrb[16].mxu0 %vm976_vm3, %v1531_v15  ;;  %v2496_v15 = vld [vmem:[%s3019_s17 + $0x8] sm:$0xff]  }
 0x9e7   : > { %2363 = vmatprep.mubr.msk.bf16.mxu0 %vm2688_vm1, %v2687_v25  ;;  %2362 = vmatpush3.bf16.msra.mxu0 %v2494_v51 }
 0x9e8   : > { %2375 = vmatprep.subr.bf16.mxu0 %v2687_v25 }
 0xa46   : > { %v1462_v16 = vpop.f32.mrb[12].mxu0 }
 0xa47   : > { %v2341_v17 = vpop.f32.mrb[13].mxu0  ;;  %v1468_v18 = vsel %vm976_vm3, %v1462_v16, -inf }
 0xa48   : > { %1469 = vmax.xlane.f32.xlu0 %v1468_v18  ;;  %v1465_v19 = vpop.f32.mrb[14].mxu0 }
 0xa49   : > { %v2342_v20 = vpop.f32.mrb[15].mxu0 }
 0xa4a   : > { %v1715_v20 = vsub.s32 4, %v3101_v30 }
 0xab9   : > { %v1574_v21 = vpop.f32.mrb[16].mxu0 }
 0xaba   : > { %v2353_v22 = vpop.f32.mrb[17].mxu0  ;;  %v1580_v23 = vsel %vm976_vm3, %v1574_v21, -inf }
 0xabb   : > { %1581 = vmax.xlane.f32.xlu1 %v1580_v23  ;;  %v1577_v24 = vpop.f32.mrb[18].mxu0  ;;  %v1716_v22 = vrot.slane %v3105_v32, %v1715_v20 }
 0xabc   : > { %v2354_v26 = vpop.f32.mrb[19].mxu0 }
 0xacc   : > { %1481 = vrot.lane.b32.xlu1 %v1421_v3, %s2690_s27  ;;  %s2581_s27 = scalar_lea.vmem %s3218_s21, 128 }
 0xacd   : > { %p2582_p13 = scmp.ne.s32.totalorder %s3218_s21, %s2581_s27 }
 0xacf   : > { %p2583_p10 = pnand %p2582_p13, %p2890_p6 }
 0xad1   : > { %p2584_p3 = pneg %p2583_p10 }
 0xad5   : > { %v1470_v28 = vpop.xlane.xlu0 %1469 }
 0xad6   : > { %v1471_v29 = vsub.f32 %v1462_v16, %v1470_v28  ;;  %v2497_v16 = vld [vmem:[%s3029_s16] sm:$0xff]  }
 0xad8   : > { %v1472_v31 = vmul.f32 1.442695, %v1471_v29 }
 0xada   : > { %2511 = vpow2.f32 %v1472_v31 }
 0xae4   : > { %v2512_v33 = vpop.eup %2511 }
 0xae5   : > { %v1474_v34 = vsel %vm976_vm3, %v2512_v33, 0.0 }
 0xae6   : > { %1475 = vadd.xlane.f32.xlu0 %v1474_v34  ;;  %v2500_v34 = vld [vmem:[%s3029_s16 + $0x18] sm:$0xff]  }
 0xb48   : > { %v1582_v35 = vpop.xlane.xlu1 %1581 }
 0xb49   : > { %v1583_v36 = vsub.f32 %v1574_v21, %v1582_v35  ;;  %v1720_v21 = vsub.s32 5, %v3101_v30  ;;  %v2224_v35 = vld [vmem:[%s842_s4] ss:$0 sm:$0xff]  ;;  %s3380_s4 = sld [smem:[#allocation23_spill]] }
 0xb4b   : > { %v1584_v37 = vmul.f32 1.442695, %v1583_v36  ;;  %v1721_v26 = vrot.slane %v3105_v32, %v1720_v21 }
 0xb4c   : > { %v1482_v38 = vpop.permute.xlu1 %1481 }
 0xb4d   : > { %2513 = vpow2.f32 %v1584_v37  ;;  %v1487_v39 = vsel %vm1044_vm6, %v1482_v38, 0 }
 0xb4e   : > { %2344 = vmatpush3.bf16.msra.mxu1 %v1487_v39 }
 0xb4f   : > { %2355 = vmatprep.subr.bf16.mxu1 %v2687_v25  ;;  %s1898_s26 = scalar_lea.sflag [#allocation4], %s3380_s4 }
 0xb57   : > { %v2514_v40 = vpop.eup %2513 }
 0xb58   : > { %v1586_v41 = vsel %vm976_vm3, %v2514_v40, 0.0 }
 0xb59   : > { %1587 = vadd.xlane.f32.xlu0 %v1586_v41 }
 0xb6f   : > { %1592 = vrot.lane.b32.xlu0 %v1421_v3, %s2691_s15 }
 0xb73   : > { %v1476_v42 = vpop.xlane.xlu0 %1475 }
 0xb74   : > { %2515 = vrcp.f32 %v1476_v42 }
 0xb7e   : > { %v2516_v43 = vpop.eup %2515 }
 0xb7f   : > { %v1478_v44 = vmul.f32 %v2516_v43, %v2512_v33  ;;  %v2499_v33 = vld [vmem:[%s3029_s16 + $0x10] sm:$0xff]   ;;  %v1802_v43 = vsub.s32 6, %v3101_v30 }
 0xb81   : > { %v1479_v45 = vpack.c.bf16 %v1478_v44, %v1478_v44 }
 0xb83   : > { %2346 = vmatmul.mubr.msk.bf16.vlgmr.msra.gmra.mrb[20].mxu1 %vm976_vm3, %v1479_v45 }
 0xb84   : > { %2357 = vmatprep.mubr.msk.bf16.mxu1 %vm2688_vm1, %v2687_v25 }
 0xbe6   : > { %v1588_v46 = vpop.xlane.xlu0 %1587 }
 0xbe7   : > { %2517 = vrcp.f32 %v1588_v46 }
 0xbea   : > { %v1593_v47 = vpop.permute.xlu0 %1592 }
 0xbeb   : > { %v1598_v27 = vsel %vm1044_vm6, %v1593_v47, 0 }
 0xbec   : > { %2356 = vmatpush3.bf16.msra.mxu1 %v1598_v27 }
 0xbed   : > { %2367 = vmatprep.subr.bf16.mxu1 %v2687_v25 }
 0xbf1   : > { %v2518_v48 = vpop.eup %2517 }
 0xbf2   : > { %v1590_v49 = vmul.f32 %v2518_v48, %v2514_v40 }
 0xbf4   : > { %v1591_v50 = vpack.c.bf16 %v1590_v49, %v1590_v49 }
 0xbf6   : > { %2358 = vmatmul.mubr.msk.bf16.vlgmr.msra.gmra.mrb[24].mxu1 %vm976_vm3, %v1591_v50 }
 0xbf7   : > { %2371 = vmatprep.mubr.msk.bf16.mxu1 %vm2688_vm1, %v2687_v25  ;;  %2368 = vmatpush3.bf16.msra.mxu1 %v2495_v14 }
 0xbf8   : > { %2369 = vmatprep.subr.bf16.mxu1 %v2687_v25 }
 0xbfb   : > { %2370 = vmatpush3.bf16.msra.mxu1 %v2496_v15 }
 0xc56   : > { %v1523_v52 = vpop.f32.mrb[20].mxu1 }
 0xc57   : > { %v2347_v53 = vpop.f32.mrb[21].mxu1 }
 0xc58   : > { %v1526_v54 = vpop.f32.mrb[22].mxu1 }
 0xc59   : > { %v2348_v55 = vpop.f32.mrb[23].mxu1 }
 0xcc9   : > { %v1634_v56 = vpop.f32.mrb[24].mxu1 }
 0xcca   : > { %1641 = vrot.lane.b32.xlu1 %v1634_v56, %s2695_s12  ;;  %v2359_v57 = vpop.f32.mrb[25].mxu1 }
 0xccb   : > { %v1637_v58 = vpop.f32.mrb[26].mxu1 }
 0xccc   : > { %v2360_v59 = vpop.f32.mrb[27].mxu1  ;;  %v1888_v58 = vsub.s32 7, %v3101_v30 }
 0xcce   : > { %v1889_v59 = vrot.slane %v3105_v32, %v1888_v58 }
 0xd3c   : > { %v1642_v61 = vpop.permute.xlu1 %1641 }
 0xd3d   : > { %v1644_v62 = vsel %vm976_vm3, %v1523_v52, %v1642_v61 }
 0xd3e   : > { %v1645_v63 = vpack.c.bf16 %v1644_v62, %v1644_v62 }
 0xd40   : > { %2364 = vmatmul.mubr.msk.bf16.vlgmr.msra.gmra.mrb[20].mxu0 %vm1215_vm7, %v1645_v63  ;;  %v2233_v63 = vld [vmem:[%s3034_s28 + $0x8] ss:$0 sm:$0xff]  ;;  %s2696_s28 = smov [#allocation7]  }
 0xd41   : > { %2383 = vmatprep.mubr.msk.bf16.mxu0 %vm2688_vm1, %v2687_v25  ;;  %2376 = vmatpush3.bf16.msra.mxu0 %v2497_v16  ;;  %s2585_s15 = sshll.u32 %s2696_s28, 4  ;;  %s2586_s15 = int_to_ptr.vmem [resolvable:$false] %s2585_s15 }
 0xd42   : > { %2377 = vmatprep.subr.bf16.mxu0 %v2687_v25  ;;  %s2587_s14 = scalar_lea.vmem %s2586_s15, 256  ;;  %p2588_p7 = scmp.lt.s32.totalorder %s3218_s21, %s2586_s15 }
 0xd43   : > { %p2589_p11 = scmp.lt.s32.totalorder %s2587_s14, %s2581_s27 }
 0xd45   : > { %p2590_p1 = por %p2589_p11, %p2588_p7 }
 0xd47   : > { %p2591_p2 = pnand %p2590_p1, %p2584_p3 }
 0xe13   : > { %v1693_v2 = vpop.f32.mrb[20].mxu0 }
 0xe14   : > { %v1694_v3 = vadd.f32 %v1693_v2, %v1649_v1  ;;  %v2365_v4 = vpop.f32.mrb[21].mxu0 }
 0xe15   : > { %v1696_v5 = vpop.f32.mrb[22].mxu0 }
 0xe16   : > { %v2366_v6 = vpop.f32.mrb[23].mxu0  ;;  %v1699_v7 = vadd.f32 %v1694_v3, %v3127_v60  ;;  %v2498_v60 = vld [vmem:[%s3029_s16 + $0x8] sm:$0xff]  }
 0xe17   : > { %2378 = vmatpush3.bf16.msra.mxu0 %v2498_v60 }
 0xe18   : > { %v1700_v8 = vsel %vm925_vm2, %v1699_v7, 0.0  ;;  %2379 = vmatprep.subr.bf16.mxu0 %v2687_v25 }
 0xe19   : > { %1701 = vadd.xlane.f32.xlu1 %v1700_v8 }
 0xe1b   : > { %2380 = vmatpush3.bf16.msra.mxu0 %v2499_v33 }
 0xe1c   : > { %2381 = vmatprep.subr.bf16.mxu0 %v2687_v25  ;;  %v1803_v25 = vrot.slane %v3105_v32, %v1802_v43 }
 0xe1f   : > { %2382 = vmatpush3.bf16.msra.mxu0 %v2500_v34 }
 0xea6   : > { %v1702_v9 = vpop.xlane.xlu1 %1701 }
 0xea7   : > { %v1703_v10 = vmul.f32 0.03125, %v1702_v9 }
 0xea9   : > { %v1704_v11 = vsub.f32 %v1699_v7, %v1703_v10 }
 0xeab   : > { %v1705_v12 = vmul.f32 %v1704_v11, %v1704_v11 }
 0xead   : > { %v1706_v13 = vsel %vm925_vm2, %v1705_v12, 0.0 }
 0xeae   : > { %1707 = vadd.xlane.f32.xlu0 %v1706_v13 }
 0xf3b   : > { %v1708_v17 = vpop.xlane.xlu0 %1707 }
 0xf3c   : > { %v1709_v18 = vmul.f32 0.03125, %v1708_v17 }
 0xf3e   : > { %v1710_v19 = vadd.f32 1e-06, %v1709_v18 }
 0xf40   : > { %2519 = vrsqrt.f32 %v1710_v19 }
 0xf4a   : > { %v2520_v23 = vpop.eup %2519 }
 0xf4b   : > { %v1712_v24 = vmul.f32 %v2520_v23, %v1704_v11 }
 0xf4d   : > { %v1717_v28 = vmul.f32 %v1716_v22, %v1712_v24 }
 0xf4f   : > { %v1722_v29 = vadd.f32 %v1721_v26, %v1717_v28 }
 0xf51   : > { %v1723_v31 = vpack.c.bf16 %v1722_v29, %v1722_v29 }
 0xf53   : > { %2372 = vmatmul.mubr.msk.bf16.vlgmr.msra.gmra.mrb[28].mxu1 %vm925_vm2, %v1723_v31 }
0x1026   : > { %v1784_v36 = vpop.f32.mrb[28].mxu1 }
0x1027   : > { %v1785_v37 = vadd.f32 %v2224_v35, %v1784_v36  ;;  %v2373_v38 = vpop.f32.mrb[29].mxu1 }
0x1028   : > { %v1787_v39 = vpop.f32.mrb[30].mxu1 }
0x1029   : > { %v1790_v40 = vmax.f32 %v1785_v37, 0.0  ;;  %v2374_v41 = vpop.f32.mrb[31].mxu1 }
0x102b   : > { %v1791_v42 = vpack.c.bf16 %v1790_v40, %v1790_v40 }
0x102d   : > { %2384 = vmatmul.mubr.msk.bf16.vlgmr.msra.gmra.mrb[24].mxu0 %vm1828_vm8, %v1791_v42 }
0x1100   : > { %v1866_v44 = vpop.f32.mrb[24].mxu0 }
0x1101   : > { %v1867_v45 = vadd.f32 %v1866_v44, %v1803_v25  ;;  %v2385_v46 = vpop.f32.mrb[25].mxu0 }
0x1102   : > { %v1869_v47 = vpop.f32.mrb[26].mxu0 }
0x1103   : > { %v2386_v27 = vpop.f32.mrb[27].mxu0  ;;  %v1872_v48 = vadd.f32 %v1867_v45, %v1722_v29 }
0x1105   : > { %v1873_v49 = vsel %vm925_vm2, %v1872_v48, 0.0 }
0x1106   : > { %1874 = vadd.xlane.f32.xlu0 %v1873_v49 }
0x1193   : > { %v1875_v50 = vpop.xlane.xlu0 %1874 }
0x1194   : > { %v1876_v51 = vmul.f32 0.03125, %v1875_v50 }
0x1196   : > { %v1877_v52 = vsub.f32 %v1872_v48, %v1876_v51 }
0x1198   : > { %v1878_v53 = vmul.f32 %v1877_v52, %v1877_v52 }
0x119a   : > { %v1879_v54 = vsel %vm925_vm2, %v1878_v53, 0.0 }
0x119b   : > { %1880 = vadd.xlane.f32.xlu1 %v1879_v54 }
0x1228   : > { %v1881_v55 = vpop.xlane.xlu1 %1880 }
0x1229   : > { %v1882_v56 = vmul.f32 0.03125, %v1881_v55 }
0x122b   : > { %v1883_v57 = vadd.f32 1e-06, %v1882_v56 }
0x122d   : > { %2521 = vrsqrt.f32 %v1883_v57 }
0x1237   : > { %v2522_v61 = vpop.eup %2521 }
0x1238   : > { %v1885_v62 = vmul.f32 %v2522_v61, %v1877_v52 }
0x123a   : > { %v1890_v0 = vmul.f32 %v1889_v59, %v1885_v62 }
0x123c   : > { %v1895_v1 = vadd.f32 %v2233_v63, %v1890_v0 }
0x123e   : > { %1896 = vst.msk [vmem:[%s3036_s19] sm:$0xff] %vm925_vm2, %v1895_v1 }
0x123f   : > { %2594 = shalt.err (!%p2591_p2)
}
0x1240   : > { %s2595_s19 = scalar_lea.hbm %s3216_s10, 128  ;;  %s2599_s11 = scalar_lea.hbm %s3382_s9, 256 }
0x1241   : > { %p2596_p9 = scmp.ne.s32.totalorder %s3216_s10, %s2595_s19  ;;  %p2600_p4 = scmp.lt.u32.totalorder %s3216_s10, %s3382_s9 }
0x1242   : > { %p2601_p8 = scmp.lt.u32.totalorder %s2599_s11, %s2595_s19  ;;  %p2603_p13 = scmp.lt.u32.totalorder %s2595_s19, %s3216_s10 }
0x1243   : > { %p2597_p5 = pnand %p2596_p9, %p2890_p6 }
0x1244   : > { %p2602_p12 = por %p2601_p8, %p2600_p4 }
0x1245   : > { %p2598_p0 = pneg %p2597_p5 }
0x1246   : > { %p2604_p10 = por %p2603_p13, %p2602_p12 }
0x1248   : > { %p2605_p3 = pnand %p2604_p10, %p2598_p0 }
0x124a   : > { %2608 = shalt.err (!%p2605_p3)
}
0x124b   : > { %2393 = dma.vmem_to_hbm [thread:$0]  (%p2890_p6), %s3218_s21, 128, %s3216_s10, %s1898_s26  }
0x124c PF: > { %s3383_s22 = sld [smem:[#allocation17_spill]]  ;;  %s3384_s13 = sld [smem:[#allocation11_spill]] }
0x124d   : > { %s3385_s20 = sld [smem:[#allocation18_spill]] }
0x1252   : > { %p2410_p7 = scmp.ge.s32.totalorder %s3383_s22, 2  ;;  %s1923_s29 = sand.u32 1, %s3384_s13  }
0x1253   : > { %p3386_p11 = scmp.ne.s32.totalorder %s3385_s20, 0  ;;  %s1924_s0 = scalar_lea.sflag [#allocation4], %s1923_s29 }
0x1255   : > { %p2404_p1 = pnand %p2410_p7, %p3386_p11 }
0x1257   : > { %2650 = dma.done.wait (!%p2404_p1), %s1924_s0, 128  }
0x1258   : > { %2652 = vsyncadd (!%p2404_p1), %s1924_s0, 4294967168  ;;  %s34_s30 = sadd.s32 1, %s3383_s22   ;;  %s3387_s24 = sld [smem:[#allocation12_spill]] }
0x1259   : > { %p31_p2 = scmp.ge.s32.totalorder %s34_s30, 6   ;;  %s3388_s25 = sld [smem:[#allocation13_spill]] }
0x125a   : > { %s3389_s26 = sld [smem:[#allocation22_spill]]  ;;  %s3390_s27 = sld [smem:[#allocation15_spill]] }
0x125b   : > { %s3391_s28 = sld [smem:[#allocation16_spill]]  ;;  %s3392_s29 = sld [smem:[#allocation19_spill]] }
0x125c   : > { %s3393_s0 = sld [smem:[#allocation21_spill]]  ;;  %33 = sbr.rel (!%p31_p2) target bundleno = 26 (0x1a), region = 187 }
0x1263   :  { %1929 = vsyncpa [#allocation3], 1 }
0x1264   :  { %1931 = vsyncpa [#allocation3 + $0x1], 1 }
0x1265   :  { %1932 = vsyncpa [#allocation6], 1 }
0x1266   :  { %1934 = vsyncpa [#allocation6 + $0x1], 1 }
0x1267   :  { %1935 = vsyncpa [#allocation4], 1 }
0x1268   :  { %1937 = vsyncpa [#allocation4 + $0x1], 1 }

</bundles_post_ra>
